<compile_context>
chip_gen: v7x
topology: tpu7x:2x2x1
jax: 0.10.0
libtpu: 0.0.40
codegen_flags: <defaults>
</compile_context>

<pallas_src>
import jax
import jax.numpy as jnp
from jax import lax
from jax.experimental import pallas as pl
from jax.experimental.pallas import tpu as pltpu

# ----------------------------- model config ---------------------------------
VOCAB = 128        # synthetic vocab (stands in for bert-base-chinese vocab)
MAX_POS = 16
HIDDEN = 32        # stands in for 768
N_HEADS = 4
HEAD_DIM = HIDDEN // N_HEADS
FFN_DIM = 64
N_LAYERS = 2
N_CLASSES = 2
CLS_PAD = 128      # classifier output padded to a full 128-lane vreg
ACTION_PAD_ID = 0  # Constants.actionPadId stand-in


# ----------------------------- fused Pallas kernel ---------------------------


def _fused_bert_kernel(
    tok_ref,                                 # [B, S] int32 (SMEM scalar prefetch)
    amask_ref,                               # [1, 1, S] f32 additive mask block
    wemb_ref, pemb_ref, temb_ref,            # embedding tables (constant VMEM blocks)
    embg_ref, embb_ref,
    wq_ref, bq_ref, wk_ref, bk_ref, wv_ref, bv_ref, wo_ref, bo_ref,
    ln1g_ref, ln1b_ref, w1_ref, b1_ref, w2_ref, b2_ref, ln2g_ref, ln2b_ref,
    clsw_ref, clsb_ref,
    out_ref,                                 # [1, S, CLS_PAD] bf16 block
):
    f32, bf16 = jnp.float32, jnp.bfloat16
    S = amask_ref.shape[-1]
    b = pl.program_id(0)

    def layernorm(v, gamma, beta):
        mu = jnp.mean(v, axis=-1, keepdims=True)
        var = jnp.mean(jnp.square(v - mu), axis=-1, keepdims=True)
        return (v - mu) * lax.rsqrt(var + 1e-12) * gamma + beta

    def mm(a_bf, w_bf):
        # bf16 MXU operands (pre-cast by caller), f32 accumulation.
        return jnp.dot(a_bf, w_bf, preferred_element_type=f32)

    # ---- fused embeddings: gather word rows by token id, add pos/type, LayerNorm ----
    rows = [wemb_ref[pl.ds(tok_ref[b, s], 1), :] for s in range(S)]   # S x [1, H]
    x = jnp.concatenate(rows, axis=0)                                 # [S, H] f32
    x = x + pemb_ref[0:S, :] + temb_ref[0:1, :]
    x = layernorm(x, embg_ref[...], embb_ref[...])

    amask = amask_ref[0]                       # [1, S] additive mask
    inv_sqrt_d = 1.0 / (HEAD_DIM ** 0.5)

    # Per-head lane masks built ONCE and reused by every layer (no per-layer iota).
    lane = lax.broadcasted_iota(jnp.int32, (1, HIDDEN), 1)
    head_masks = [
        jnp.logical_and(lane >= h * HEAD_DIM, lane < (h + 1) * HEAD_DIM).astype(f32)
        for h in range(N_HEADS)
    ]

    for li in range(N_LAYERS):
        xb = x.astype(bf16)                                   # hoisted cast, reused 3x
        q = (mm(xb, wq_ref[li]) + bq_ref[li]) * inv_sqrt_d    # softmax scale folded in
        k = mm(xb, wk_ref[li]) + bk_ref[li]
        v = mm(xb, wv_ref[li]) + bv_ref[li]

        # All heads in ONE score matmul: masked per-head queries stacked on sublanes.
        # Masking q's lanes of head h zeroes every cross-head contraction term, so
        # rows [h*S:(h+1)*S] of `sc` are exactly head h's scores.
        q_st = jnp.concatenate([q * m for m in head_masks], axis=0).astype(bf16)  # [nH*S, H]
        sc = lax.dot_general(
            q_st, k.astype(bf16),
            dimension_numbers=(((1,), (1,)), ((), ())),
            preferred_element_type=f32,
        )                                                     # [nH*S, S]
        sc = sc + amask
        sc = sc - jnp.max(sc, axis=-1, keepdims=True)
        p = jnp.exp(sc)
        p = p * pl.reciprocal(jnp.sum(p, axis=-1, keepdims=True), approx=True)

        # One PV matmul for all heads; keep only head h's lanes of its row block.
        pv = mm(p.astype(bf16), v.astype(bf16))               # [nH*S, H]
        ctx = head_masks[0] * pv[0:S, :]
        for h in range(1, N_HEADS):
            ctx = ctx + head_masks[h] * pv[h * S:(h + 1) * S, :]

        attn = mm(ctx.astype(bf16), wo_ref[li]) + bo_ref[li]
        x = layernorm(attn + x, ln1g_ref[li], ln1b_ref[li])

        # TODO(synk): HF BERT uses the exact (erf) GELU; tanh approximation used here.
        xf = x.astype(bf16)
        ff = jax.nn.gelu(mm(xf, w1_ref[li]) + b1_ref[li])
        ff = mm(ff.astype(bf16), w2_ref[li]) + b2_ref[li]
        x = layernorm(ff + x, ln2g_ref[li], ln2b_ref[li])

    # Lane-dense bf16 store: [S, CLS_PAD=128]; wrapper slices the 2 real classes.
    out_ref[0] = (mm(x.astype(bf16), clsw_ref[...]) + clsb_ref[...]).astype(bf16)


def _rep_spec(shape):
    """Full-array block, same block every grid step (stays VMEM-resident)."""
    n = len(shape)
    return pl.BlockSpec(shape, lambda b, tok, _n=n: (0,) * _n)


def _batch_spec(shape):
    """Block of one batch element along the leading axis."""
    n = len(shape)
    return pl.BlockSpec(
        (1,) + tuple(shape[1:]), lambda b, tok, _n=n: (b,) + (0,) * (_n - 1)
    )


def fused_forward(token_ids, add_mask, params):
    """token_ids: [B, S] int32; add_mask: [B, 1, S] f32 additive attention mask."""
    B, S = token_ids.shape
    wdt = jnp.bfloat16
    args = (
        add_mask,
        params["word_emb"], params["pos_emb"], params["type_emb"],
        params["emb_ln_g"], params["emb_ln_b"],
        params["wq"].astype(wdt), params["bq"],
        params["wk"].astype(wdt), params["bk"],
        params["wv"].astype(wdt), params["bv"],
        params["wo"].astype(wdt), params["bo"],
        params["ln1_g"], params["ln1_b"],
        params["w1"].astype(wdt), params["b1"],
        params["w2"].astype(wdt), params["b2"],
        params["ln2_g"], params["ln2_b"],
        params["cls_w"].astype(wdt), params["cls_b"],
    )
    in_specs = [_batch_spec(add_mask.shape)] + [_rep_spec(a.shape) for a in args[1:]]
    return pl.pallas_call(
        _fused_bert_kernel,
        out_shape=jax.ShapeDtypeStruct((B, S, CLS_PAD), jnp.bfloat16),
        grid_spec=pltpu.PrefetchScalarGridSpec(
            num_scalar_prefetch=1,           # token_ids -> SMEM, in-kernel gather
            grid=(B,),
            in_specs=in_specs,
            out_specs=_batch_spec((B, S, CLS_PAD)),
        ),
        compiler_params=pltpu.CompilerParams(
            dimension_semantics=("parallel",)
        ),
    )(token_ids, *args)


# ----------------------------- parameters ------------------------------------


def init_params(key):
    ks = jax.random.split(key, 12)

    def nrm(k, shape, std=0.02):
        return (std * jax.random.normal(k, shape)).astype(jnp.float32)

    ones = lambda s: jnp.ones(s, jnp.float32)
    zeros = lambda s: jnp.zeros(s, jnp.float32)
    L = N_LAYERS

    params = {
        "word_emb": nrm(ks[0], (VOCAB, HIDDEN)),
        "pos_emb": nrm(ks[1], (MAX_POS, HIDDEN)),
        "type_emb": nrm(ks[2], (2, HIDDEN)),
        "emb_ln_g": ones((1, HIDDEN)),
        "emb_ln_b": zeros((1, HIDDEN)),
        # transformer layers stacked on a leading layer axis
        "wq": nrm(ks[3], (L, HIDDEN, HIDDEN)),
        "wk": nrm(ks[4], (L, HIDDEN, HIDDEN)),
        "wv": nrm(ks[5], (L, HIDDEN, HIDDEN)),
        "wo": nrm(ks[6], (L, HIDDEN, HIDDEN)),
        "bq": zeros((L, 1, HIDDEN)),
        "bk": zeros((L, 1, HIDDEN)),
        "bv": zeros((L, 1, HIDDEN)),
        "bo": zeros((L, 1, HIDDEN)),
        "ln1_g": ones((L, 1, HIDDEN)),
        "ln1_b": zeros((L, 1, HIDDEN)),
        "w1": nrm(ks[7], (L, HIDDEN, FFN_DIM)),
        "b1": zeros((L, 1, FFN_DIM)),
        "w2": nrm(ks[8], (L, FFN_DIM, HIDDEN)),
        "b2": zeros((L, 1, HIDDEN)),
        "ln2_g": ones((L, 1, HIDDEN)),
        "ln2_b": zeros((L, 1, HIDDEN)),
    }

    # self.cls = nn.Linear(768->HIDDEN, 2): xavier_uniform weight, uniform bias.
    # Padded to 128 output lanes so the kernel's HBM store is lane-dense.
    bound = (6.0 / (HIDDEN + N_CLASSES)) ** 0.5
    cw = jax.random.uniform(ks[9], (HIDDEN, N_CLASSES), minval=-bound, maxval=bound)
    cb = jax.random.uniform(ks[10], (N_CLASSES,))
    params["cls_w"] = (
        jnp.zeros((HIDDEN, CLS_PAD), jnp.float32).at[:, :N_CLASSES].set(cw)
    )
    params["cls_b"] = (
        jnp.zeros((1, CLS_PAD), jnp.float32).at[:, :N_CLASSES].set(cb)
    )
    return params


# ----------------------------- forward pass -----------------------------------


def bert_char_segmentor_forward(params, token_ids, golds):
    # token_ids: [B, seq_len + 2] int32 (stands in for tokenizer.encode output)
    # golds    : [B, seq_len]     int32
    # TODO(synk): BertTokenizer string encoding has no Pallas/JAX equivalent;
    # token ids are taken directly as integer inputs.
    B, S = token_ids.shape
    seq_len = golds.shape[1]

    # __tokenize mask semantics: mask = ones; mask[:, 2:] = (golds != padId)
    mask = jnp.ones((B, S), dtype=jnp.float32)
    mask = mask.at[:, 2:].set((golds != ACTION_PAD_ID).astype(jnp.float32))
    add_mask = ((1.0 - mask) * -1e9)[:, None, :]  # [B, 1, S] additive mask

    # Everything else (embedding gather + encoder + classifier) is one fused kernel.
    out = fused_forward(token_ids, add_mask, params)  # [B, S, 128] bf16

    # hidden_state[:, 1:seq_len+1, :] -> cls: slice kept positions & real classes.
    return out[:, 1 : seq_len + 1, :N_CLASSES].astype(jnp.float32)


# ----------------------------- main -------------------------------------------

if __name__ == "__main__":
    key = jax.random.PRNGKey(0)
    k_param, k_tok, k_gold = jax.random.split(key, 3)

    B, seq_len = 2, 8
    params = init_params(k_param)

    token_ids = jax.random.randint(k_tok, (B, seq_len + 2), 0, VOCAB, dtype=jnp.int32)
    golds = jax.random.randint(k_gold, (B, seq_len), 1, 4, dtype=jnp.int32)
    # introduce some padding so the mask path is exercised
    golds = golds.at[1, -2:].set(ACTION_PAD_ID)

    fwd = jax.jit(bert_char_segmentor_forward)
    pred = jax.block_until_ready(fwd(params, token_ids, golds))

    assert pred.shape == (B, seq_len, N_CLASSES), pred.shape
    assert pred.dtype == jnp.float32
    assert bool(jnp.isfinite(pred).all())
    print("KERNEL_OK")
</pallas_src>

<mosaic_0001>
module attributes {stable_mosaic.version = 11 : i64} {
  func.func @_fused_bert_kernel(%arg0: i32, %arg1: memref<2x10xi32, #tpu.memory_space<smem>>, %arg2: memref<1x1x10xf32, #tpu.memory_space<vmem>>, %arg3: memref<128x32xf32, #tpu.memory_space<vmem>>, %arg4: memref<16x32xf32, #tpu.memory_space<vmem>>, %arg5: memref<2x32xf32, #tpu.memory_space<vmem>>, %arg6: memref<1x32xf32, #tpu.memory_space<vmem>>, %arg7: memref<1x32xf32, #tpu.memory_space<vmem>>, %arg8: memref<2x32x32xbf16, #tpu.memory_space<vmem>>, %arg9: memref<2x1x32xf32, #tpu.memory_space<vmem>>, %arg10: memref<2x32x32xbf16, #tpu.memory_space<vmem>>, %arg11: memref<2x1x32xf32, #tpu.memory_space<vmem>>, %arg12: memref<2x32x32xbf16, #tpu.memory_space<vmem>>, %arg13: memref<2x1x32xf32, #tpu.memory_space<vmem>>, %arg14: memref<2x32x32xbf16, #tpu.memory_space<vmem>>, %arg15: memref<2x1x32xf32, #tpu.memory_space<vmem>>, %arg16: memref<2x1x32xf32, #tpu.memory_space<vmem>>, %arg17: memref<2x1x32xf32, #tpu.memory_space<vmem>>, %arg18: memref<2x32x64xbf16, #tpu.memory_space<vmem>>, %arg19: memref<2x1x64xf32, #tpu.memory_space<vmem>>, %arg20: memref<2x64x32xbf16, #tpu.memory_space<vmem>>, %arg21: memref<2x1x32xf32, #tpu.memory_space<vmem>>, %arg22: memref<2x1x32xf32, #tpu.memory_space<vmem>>, %arg23: memref<2x1x32xf32, #tpu.memory_space<vmem>>, %arg24: memref<32x128xbf16, #tpu.memory_space<vmem>>, %arg25: memref<1x128xf32, #tpu.memory_space<vmem>>, %arg26: memref<1x10x128xbf16, #tpu.memory_space<vmem>>) attributes {dimension_semantics = [#tpu.dimension_semantics<parallel>], iteration_bounds = array<i64: 2>, scalar_prefetch = 1 : i64, scratch_operands = 0 : i64, tpu.core_type = #tpu.core_type<tc>, window_params = [{transform_indices = @transform_0, window_bounds = array<i64: 1, 1, 10>}, {pipeline_mode = #tpu.pipeline_mode<synchronous>, transform_indices = @transform_1, window_bounds = array<i64: 128, 32>}, {pipeline_mode = #tpu.pipeline_mode<synchronous>, transform_indices = @transform_2, window_bounds = array<i64: 16, 32>}, {pipeline_mode = #tpu.pipeline_mode<synchronous>, transform_indices = @transform_3, window_bounds = array<i64: 2, 32>}, {pipeline_mode = #tpu.pipeline_mode<synchronous>, transform_indices = @transform_4, window_bounds = array<i64: 1, 32>}, {pipeline_mode = #tpu.pipeline_mode<synchronous>, transform_indices = @transform_5, window_bounds = array<i64: 1, 32>}, {pipeline_mode = #tpu.pipeline_mode<synchronous>, transform_indices = @transform_6, window_bounds = array<i64: 2, 32, 32>}, {pipeline_mode = #tpu.pipeline_mode<synchronous>, transform_indices = @transform_7, window_bounds = array<i64: 2, 1, 32>}, {pipeline_mode = #tpu.pipeline_mode<synchronous>, transform_indices = @transform_8, window_bounds = array<i64: 2, 32, 32>}, {pipeline_mode = #tpu.pipeline_mode<synchronous>, transform_indices = @transform_9, window_bounds = array<i64: 2, 1, 32>}, {pipeline_mode = #tpu.pipeline_mode<synchronous>, transform_indices = @transform_10, window_bounds = array<i64: 2, 32, 32>}, {pipeline_mode = #tpu.pipeline_mode<synchronous>, transform_indices = @transform_11, window_bounds = array<i64: 2, 1, 32>}, {pipeline_mode = #tpu.pipeline_mode<synchronous>, transform_indices = @transform_12, window_bounds = array<i64: 2, 32, 32>}, {pipeline_mode = #tpu.pipeline_mode<synchronous>, transform_indices = @transform_13, window_bounds = array<i64: 2, 1, 32>}, {pipeline_mode = #tpu.pipeline_mode<synchronous>, transform_indices = @transform_14, window_bounds = array<i64: 2, 1, 32>}, {pipeline_mode = #tpu.pipeline_mode<synchronous>, transform_indices = @transform_15, window_bounds = array<i64: 2, 1, 32>}, {pipeline_mode = #tpu.pipeline_mode<synchronous>, transform_indices = @transform_16, window_bounds = array<i64: 2, 32, 64>}, {pipeline_mode = #tpu.pipeline_mode<synchronous>, transform_indices = @transform_17, window_bounds = array<i64: 2, 1, 64>}, {pipeline_mode = #tpu.pipeline_mode<synchronous>, transform_indices = @transform_18, window_bounds = array<i64: 2, 64, 32>}, {pipeline_mode = #tpu.pipeline_mode<synchronous>, transform_indices = @transform_19, window_bounds = array<i64: 2, 1, 32>}, {pipeline_mode = #tpu.pipeline_mode<synchronous>, transform_indices = @transform_20, window_bounds = array<i64: 2, 1, 32>}, {pipeline_mode = #tpu.pipeline_mode<synchronous>, transform_indices = @transform_21, window_bounds = array<i64: 2, 1, 32>}, {pipeline_mode = #tpu.pipeline_mode<synchronous>, transform_indices = @transform_22, window_bounds = array<i64: 32, 128>}, {pipeline_mode = #tpu.pipeline_mode<synchronous>, transform_indices = @transform_23, window_bounds = array<i64: 1, 128>}, {transform_indices = @transform_24, window_bounds = array<i64: 1, 10, 128>}]} {
    %0 = arith.index_cast %arg0 : i32 to index
    %c0 = arith.constant 0 : index
    %1 = memref.load %arg1[%0, %c0] : memref<2x10xi32, #tpu.memory_space<smem>>
    %2 = arith.index_cast %1 : i32 to index
    %c0_0 = arith.constant 0 : index
    %3 = vector.load %arg3[%2, %c0_0] : memref<128x32xf32, #tpu.memory_space<vmem>>, vector<1x32xf32>
    %4 = arith.index_cast %arg0 : i32 to index
    %c1 = arith.constant 1 : index
    %5 = memref.load %arg1[%4, %c1] : memref<2x10xi32, #tpu.memory_space<smem>>
    %6 = arith.index_cast %5 : i32 to index
    %c0_1 = arith.constant 0 : index
    %7 = vector.load %arg3[%6, %c0_1] : memref<128x32xf32, #tpu.memory_space<vmem>>, vector<1x32xf32>
    %8 = arith.index_cast %arg0 : i32 to index
    %c2 = arith.constant 2 : index
    %9 = memref.load %arg1[%8, %c2] : memref<2x10xi32, #tpu.memory_space<smem>>
    %10 = arith.index_cast %9 : i32 to index
    %c0_2 = arith.constant 0 : index
    %11 = vector.load %arg3[%10, %c0_2] : memref<128x32xf32, #tpu.memory_space<vmem>>, vector<1x32xf32>
    %12 = arith.index_cast %arg0 : i32 to index
    %c3 = arith.constant 3 : index
    %13 = memref.load %arg1[%12, %c3] : memref<2x10xi32, #tpu.memory_space<smem>>
    %14 = arith.index_cast %13 : i32 to index
    %c0_3 = arith.constant 0 : index
    %15 = vector.load %arg3[%14, %c0_3] : memref<128x32xf32, #tpu.memory_space<vmem>>, vector<1x32xf32>
    %16 = arith.index_cast %arg0 : i32 to index
    %c4 = arith.constant 4 : index
    %17 = memref.load %arg1[%16, %c4] : memref<2x10xi32, #tpu.memory_space<smem>>
    %18 = arith.index_cast %17 : i32 to index
    %c0_4 = arith.constant 0 : index
    %19 = vector.load %arg3[%18, %c0_4] : memref<128x32xf32, #tpu.memory_space<vmem>>, vector<1x32xf32>
    %20 = arith.index_cast %arg0 : i32 to index
    %c5 = arith.constant 5 : index
    %21 = memref.load %arg1[%20, %c5] : memref<2x10xi32, #tpu.memory_space<smem>>
    %22 = arith.index_cast %21 : i32 to index
    %c0_5 = arith.constant 0 : index
    %23 = vector.load %arg3[%22, %c0_5] : memref<128x32xf32, #tpu.memory_space<vmem>>, vector<1x32xf32>
    %24 = arith.index_cast %arg0 : i32 to index
    %c6 = arith.constant 6 : index
    %25 = memref.load %arg1[%24, %c6] : memref<2x10xi32, #tpu.memory_space<smem>>
    %26 = arith.index_cast %25 : i32 to index
    %c0_6 = arith.constant 0 : index
    %27 = vector.load %arg3[%26, %c0_6] : memref<128x32xf32, #tpu.memory_space<vmem>>, vector<1x32xf32>
    %28 = arith.index_cast %arg0 : i32 to index
    %c7 = arith.constant 7 : index
    %29 = memref.load %arg1[%28, %c7] : memref<2x10xi32, #tpu.memory_space<smem>>
    %30 = arith.index_cast %29 : i32 to index
    %c0_7 = arith.constant 0 : index
    %31 = vector.load %arg3[%30, %c0_7] : memref<128x32xf32, #tpu.memory_space<vmem>>, vector<1x32xf32>
    %32 = arith.index_cast %arg0 : i32 to index
    %c8 = arith.constant 8 : index
    %33 = memref.load %arg1[%32, %c8] : memref<2x10xi32, #tpu.memory_space<smem>>
    %34 = arith.index_cast %33 : i32 to index
    %c0_8 = arith.constant 0 : index
    %35 = vector.load %arg3[%34, %c0_8] : memref<128x32xf32, #tpu.memory_space<vmem>>, vector<1x32xf32>
    %36 = arith.index_cast %arg0 : i32 to index
    %c9 = arith.constant 9 : index
    %37 = memref.load %arg1[%36, %c9] : memref<2x10xi32, #tpu.memory_space<smem>>
    %38 = arith.index_cast %37 : i32 to index
    %c0_9 = arith.constant 0 : index
    %39 = vector.load %arg3[%38, %c0_9] : memref<128x32xf32, #tpu.memory_space<vmem>>, vector<1x32xf32>
    %40 = tpu.concatenate %3, %7, %11, %15, %19, %23, %27, %31, %35, %39 in 0 : vector<1x32xf32>, vector<1x32xf32>, vector<1x32xf32>, vector<1x32xf32>, vector<1x32xf32>, vector<1x32xf32>, vector<1x32xf32>, vector<1x32xf32>, vector<1x32xf32>, vector<1x32xf32> -> vector<10x32xf32>
    %c0_10 = arith.constant 0 : index
    %c0_11 = arith.constant 0 : index
    %41 = vector.load %arg4[%c0_10, %c0_11] : memref<16x32xf32, #tpu.memory_space<vmem>>, vector<10x32xf32>
    %42 = arith.addf %40, %41 : vector<10x32xf32>
    %c0_12 = arith.constant 0 : index
    %c0_13 = arith.constant 0 : index
    %43 = vector.load %arg5[%c0_12, %c0_13] : memref<2x32xf32, #tpu.memory_space<vmem>>, vector<1x32xf32>
    %44 = vector.broadcast %43 : vector<1x32xf32> to vector<10x32xf32>
    %45 = arith.addf %42, %44 : vector<10x32xf32>
    %c0_14 = arith.constant 0 : index
    %c0_15 = arith.constant 0 : index
    %46 = vector.load %arg6[%c0_14, %c0_15] : memref<1x32xf32, #tpu.memory_space<vmem>>, vector<1x32xf32>
    %c0_16 = arith.constant 0 : index
    %c0_17 = arith.constant 0 : index
    %47 = vector.load %arg7[%c0_16, %c0_17] : memref<1x32xf32, #tpu.memory_space<vmem>>, vector<1x32xf32>
    %cst = arith.constant dense<0.000000e+00> : vector<10xf32>
    %48 = vector.multi_reduction <add>, %45, %cst [1] : vector<10x32xf32> to vector<10xf32>
    %49 = vector.shape_cast %48 : vector<10xf32> to vector<10x1xf32>
    %cst_18 = arith.constant 3.200000e+01 : f32
    %50 = vector.broadcast %cst_18 : f32 to vector<10x1xf32>
    %51 = arith.divf %49, %50 : vector<10x1xf32>
    %52 = vector.broadcast %51 : vector<10x1xf32> to vector<10x32xf32>
    %53 = arith.subf %45, %52 : vector<10x32xf32>
    %54 = arith.mulf %53, %53 : vector<10x32xf32>
    %cst_19 = arith.constant dense<0.000000e+00> : vector<10xf32>
    %55 = vector.multi_reduction <add>, %54, %cst_19 [1] : vector<10x32xf32> to vector<10xf32>
    %56 = vector.shape_cast %55 : vector<10xf32> to vector<10x1xf32>
    %cst_20 = arith.constant 3.200000e+01 : f32
    %57 = vector.broadcast %cst_20 : f32 to vector<10x1xf32>
    %58 = arith.divf %56, %57 : vector<10x1xf32>
    %59 = vector.broadcast %51 : vector<10x1xf32> to vector<10x32xf32>
    %60 = arith.subf %45, %59 : vector<10x32xf32>
    %cst_21 = arith.constant 9.99999996E-13 : f32
    %61 = vector.broadcast %cst_21 : f32 to vector<10x1xf32>
    %62 = arith.addf %58, %61 : vector<10x1xf32>
    %63 = math.rsqrt %62 : vector<10x1xf32>
    %64 = vector.broadcast %63 : vector<10x1xf32> to vector<10x32xf32>
    %65 = arith.mulf %60, %64 : vector<10x32xf32>
    %66 = vector.broadcast %46 : vector<1x32xf32> to vector<10x32xf32>
    %67 = arith.mulf %65, %66 : vector<10x32xf32>
    %68 = vector.broadcast %47 : vector<1x32xf32> to vector<10x32xf32>
    %69 = arith.addf %67, %68 : vector<10x32xf32>
    %c0_22 = arith.constant 0 : index
    %c0_23 = arith.constant 0 : index
    %c0_24 = arith.constant 0 : index
    %70 = vector.load %arg2[%c0_22, %c0_23, %c0_24] : memref<1x1x10xf32, #tpu.memory_space<vmem>>, vector<1x1x10xf32>
    %71 = vector.shape_cast %70 : vector<1x1x10xf32> to vector<1x10xf32>
    %72 = tpu.iota {dimensions = array<i32: 1>} : vector<1x32xi32>
    %c0_i32 = arith.constant 0 : i32
    %73 = vector.broadcast %c0_i32 : i32 to vector<1x32xi32>
    %74 = arith.cmpi sge, %72, %73 : vector<1x32xi32>
    %c8_i32 = arith.constant 8 : i32
    %75 = vector.broadcast %c8_i32 : i32 to vector<1x32xi32>
    %76 = arith.cmpi slt, %72, %75 : vector<1x32xi32>
    %77 = arith.andi %74, %76 : vector<1x32xi1>
    %78 = arith.extui %77 : vector<1x32xi1> to vector<1x32xi32>
    %79 = arith.sitofp %78 : vector<1x32xi32> to vector<1x32xf32>
    %c8_i32_25 = arith.constant 8 : i32
    %80 = vector.broadcast %c8_i32_25 : i32 to vector<1x32xi32>
    %81 = arith.cmpi sge, %72, %80 : vector<1x32xi32>
    %c16_i32 = arith.constant 16 : i32
    %82 = vector.broadcast %c16_i32 : i32 to vector<1x32xi32>
    %83 = arith.cmpi slt, %72, %82 : vector<1x32xi32>
    %84 = arith.andi %81, %83 : vector<1x32xi1>
    %85 = arith.extui %84 : vector<1x32xi1> to vector<1x32xi32>
    %86 = arith.sitofp %85 : vector<1x32xi32> to vector<1x32xf32>
    %c16_i32_26 = arith.constant 16 : i32
    %87 = vector.broadcast %c16_i32_26 : i32 to vector<1x32xi32>
    %88 = arith.cmpi sge, %72, %87 : vector<1x32xi32>
    %c24_i32 = arith.constant 24 : i32
    %89 = vector.broadcast %c24_i32 : i32 to vector<1x32xi32>
    %90 = arith.cmpi slt, %72, %89 : vector<1x32xi32>
    %91 = arith.andi %88, %90 : vector<1x32xi1>
    %92 = arith.extui %91 : vector<1x32xi1> to vector<1x32xi32>
    %93 = arith.sitofp %92 : vector<1x32xi32> to vector<1x32xf32>
    %c24_i32_27 = arith.constant 24 : i32
    %94 = vector.broadcast %c24_i32_27 : i32 to vector<1x32xi32>
    %95 = arith.cmpi sge, %72, %94 : vector<1x32xi32>
    %c32_i32 = arith.constant 32 : i32
    %96 = vector.broadcast %c32_i32 : i32 to vector<1x32xi32>
    %97 = arith.cmpi slt, %72, %96 : vector<1x32xi32>
    %98 = arith.andi %95, %97 : vector<1x32xi1>
    %99 = arith.extui %98 : vector<1x32xi1> to vector<1x32xi32>
    %100 = arith.sitofp %99 : vector<1x32xi32> to vector<1x32xf32>
    %101 = arith.truncf %69 : vector<10x32xf32> to vector<10x32xbf16>
    %c0_28 = arith.constant 0 : index
    %c0_29 = arith.constant 0 : index
    %c0_30 = arith.constant 0 : index
    %102 = vector.load %arg8[%c0_28, %c0_29, %c0_30] : memref<2x32x32xbf16, #tpu.memory_space<vmem>>, vector<1x32x32xbf16>
    %103 = vector.shape_cast %102 : vector<1x32x32xbf16> to vector<32x32xbf16>
    %cst_31 = arith.constant dense<0.000000e+00> : vector<10x32xf32>
    %104 = tpu.matmul %101, %103, %cst_31 {dimension_numbers = #tpu.dot_dimension_numbers<[1], [0], [0], [1], [0, 0, 1, 1], [], []>} : vector<10x32xbf16>, vector<32x32xbf16>, vector<10x32xf32> -> vector<10x32xf32>
    %c0_32 = arith.constant 0 : index
    %c0_33 = arith.constant 0 : index
    %c0_34 = arith.constant 0 : index
    %105 = vector.load %arg9[%c0_32, %c0_33, %c0_34] : memref<2x1x32xf32, #tpu.memory_space<vmem>>, vector<1x1x32xf32>
    %106 = vector.shape_cast %105 : vector<1x1x32xf32> to vector<1x32xf32>
    %107 = vector.broadcast %106 : vector<1x32xf32> to vector<10x32xf32>
    %108 = arith.addf %104, %107 : vector<10x32xf32>
    %cst_35 = arith.constant 0.353553385 : f32
    %109 = vector.broadcast %cst_35 : f32 to vector<10x32xf32>
    %110 = arith.mulf %108, %109 : vector<10x32xf32>
    %c0_36 = arith.constant 0 : index
    %c0_37 = arith.constant 0 : index
    %c0_38 = arith.constant 0 : index
    %111 = vector.load %arg10[%c0_36, %c0_37, %c0_38] : memref<2x32x32xbf16, #tpu.memory_space<vmem>>, vector<1x32x32xbf16>
    %112 = vector.shape_cast %111 : vector<1x32x32xbf16> to vector<32x32xbf16>
    %cst_39 = arith.constant dense<0.000000e+00> : vector<10x32xf32>
    %113 = tpu.matmul %101, %112, %cst_39 {dimension_numbers = #tpu.dot_dimension_numbers<[1], [0], [0], [1], [0, 0, 1, 1], [], []>} : vector<10x32xbf16>, vector<32x32xbf16>, vector<10x32xf32> -> vector<10x32xf32>
    %c0_40 = arith.constant 0 : index
    %c0_41 = arith.constant 0 : index
    %c0_42 = arith.constant 0 : index
    %114 = vector.load %arg11[%c0_40, %c0_41, %c0_42] : memref<2x1x32xf32, #tpu.memory_space<vmem>>, vector<1x1x32xf32>
    %115 = vector.shape_cast %114 : vector<1x1x32xf32> to vector<1x32xf32>
    %116 = vector.broadcast %115 : vector<1x32xf32> to vector<10x32xf32>
    %117 = arith.addf %113, %116 : vector<10x32xf32>
    %c0_43 = arith.constant 0 : index
    %c0_44 = arith.constant 0 : index
    %c0_45 = arith.constant 0 : index
    %118 = vector.load %arg12[%c0_43, %c0_44, %c0_45] : memref<2x32x32xbf16, #tpu.memory_space<vmem>>, vector<1x32x32xbf16>
    %119 = vector.shape_cast %118 : vector<1x32x32xbf16> to vector<32x32xbf16>
    %cst_46 = arith.constant dense<0.000000e+00> : vector<10x32xf32>
    %120 = tpu.matmul %101, %119, %cst_46 {dimension_numbers = #tpu.dot_dimension_numbers<[1], [0], [0], [1], [0, 0, 1, 1], [], []>} : vector<10x32xbf16>, vector<32x32xbf16>, vector<10x32xf32> -> vector<10x32xf32>
    %c0_47 = arith.constant 0 : index
    %c0_48 = arith.constant 0 : index
    %c0_49 = arith.constant 0 : index
    %121 = vector.load %arg13[%c0_47, %c0_48, %c0_49] : memref<2x1x32xf32, #tpu.memory_space<vmem>>, vector<1x1x32xf32>
    %122 = vector.shape_cast %121 : vector<1x1x32xf32> to vector<1x32xf32>
    %123 = vector.broadcast %122 : vector<1x32xf32> to vector<10x32xf32>
    %124 = arith.addf %120, %123 : vector<10x32xf32>
    %125 = vector.broadcast %79 : vector<1x32xf32> to vector<10x32xf32>
    %126 = arith.mulf %110, %125 : vector<10x32xf32>
    %127 = vector.broadcast %86 : vector<1x32xf32> to vector<10x32xf32>
    %128 = arith.mulf %110, %127 : vector<10x32xf32>
    %129 = vector.broadcast %93 : vector<1x32xf32> to vector<10x32xf32>
    %130 = arith.mulf %110, %129 : vector<10x32xf32>
    %131 = vector.broadcast %100 : vector<1x32xf32> to vector<10x32xf32>
    %132 = arith.mulf %110, %131 : vector<10x32xf32>
    %133 = tpu.concatenate %126, %128, %130, %132 in 0 : vector<10x32xf32>, vector<10x32xf32>, vector<10x32xf32>, vector<10x32xf32> -> vector<40x32xf32>
    %134 = arith.truncf %133 : vector<40x32xf32> to vector<40x32xbf16>
    %135 = arith.truncf %117 : vector<10x32xf32> to vector<10x32xbf16>
    %cst_50 = arith.constant dense<0.000000e+00> : vector<40x10xf32>
    %136 = tpu.matmul %134, %135, %cst_50 {dimension_numbers = #tpu.dot_dimension_numbers<[1], [1], [0], [0], [0, 0, 1, 0], [], []>} : vector<40x32xbf16>, vector<10x32xbf16>, vector<40x10xf32> -> vector<40x10xf32>
    %137 = vector.broadcast %71 : vector<1x10xf32> to vector<40x10xf32>
    %138 = arith.addf %136, %137 : vector<40x10xf32>
    %cst_51 = arith.constant dense<0xFF800000> : vector<40xf32>
    %139 = vector.multi_reduction <maximumf>, %138, %cst_51 [1] : vector<40x10xf32> to vector<40xf32>
    %140 = vector.shape_cast %139 : vector<40xf32> to vector<40x1xf32>
    %141 = vector.broadcast %140 : vector<40x1xf32> to vector<40x10xf32>
    %142 = arith.subf %138, %141 : vector<40x10xf32>
    %143 = math.exp %142 : vector<40x10xf32>
    %cst_52 = arith.constant dense<0.000000e+00> : vector<40xf32>
    %144 = vector.multi_reduction <add>, %143, %cst_52 [1] : vector<40x10xf32> to vector<40xf32>
    %145 = vector.shape_cast %144 : vector<40xf32> to vector<40x1xf32>
    %146 = tpu.reciprocal %145 {approx = true} : vector<40x1xf32> -> vector<40x1xf32>
    %147 = vector.broadcast %146 : vector<40x1xf32> to vector<40x10xf32>
    %148 = arith.mulf %143, %147 : vector<40x10xf32>
    %149 = arith.truncf %148 : vector<40x10xf32> to vector<40x10xbf16>
    %150 = arith.truncf %124 : vector<10x32xf32> to vector<10x32xbf16>
    %cst_53 = arith.constant dense<0.000000e+00> : vector<40x32xf32>
    %151 = tpu.matmul %149, %150, %cst_53 {dimension_numbers = #tpu.dot_dimension_numbers<[1], [0], [0], [1], [0, 0, 1, 1], [], []>} : vector<40x10xbf16>, vector<10x32xbf16>, vector<40x32xf32> -> vector<40x32xf32>
    %152 = vector.extract_strided_slice %151 {offsets = [0, 0], sizes = [10, 32], strides = [1, 1]} : vector<40x32xf32> to vector<10x32xf32>
    %153 = vector.broadcast %79 : vector<1x32xf32> to vector<10x32xf32>
    %154 = arith.mulf %153, %152 : vector<10x32xf32>
    %155 = vector.extract_strided_slice %151 {offsets = [10, 0], sizes = [10, 32], strides = [1, 1]} : vector<40x32xf32> to vector<10x32xf32>
    %156 = vector.broadcast %86 : vector<1x32xf32> to vector<10x32xf32>
    %157 = arith.mulf %156, %155 : vector<10x32xf32>
    %158 = arith.addf %154, %157 : vector<10x32xf32>
    %159 = vector.extract_strided_slice %151 {offsets = [20, 0], sizes = [10, 32], strides = [1, 1]} : vector<40x32xf32> to vector<10x32xf32>
    %160 = vector.broadcast %93 : vector<1x32xf32> to vector<10x32xf32>
    %161 = arith.mulf %160, %159 : vector<10x32xf32>
    %162 = arith.addf %158, %161 : vector<10x32xf32>
    %163 = vector.extract_strided_slice %151 {offsets = [30, 0], sizes = [10, 32], strides = [1, 1]} : vector<40x32xf32> to vector<10x32xf32>
    %164 = vector.broadcast %100 : vector<1x32xf32> to vector<10x32xf32>
    %165 = arith.mulf %164, %163 : vector<10x32xf32>
    %166 = arith.addf %162, %165 : vector<10x32xf32>
    %167 = arith.truncf %166 : vector<10x32xf32> to vector<10x32xbf16>
    %c0_54 = arith.constant 0 : index
    %c0_55 = arith.constant 0 : index
    %c0_56 = arith.constant 0 : index
    %168 = vector.load %arg14[%c0_54, %c0_55, %c0_56] : memref<2x32x32xbf16, #tpu.memory_space<vmem>>, vector<1x32x32xbf16>
    %169 = vector.shape_cast %168 : vector<1x32x32xbf16> to vector<32x32xbf16>
    %cst_57 = arith.constant dense<0.000000e+00> : vector<10x32xf32>
    %170 = tpu.matmul %167, %169, %cst_57 {dimension_numbers = #tpu.dot_dimension_numbers<[1], [0], [0], [1], [0, 0, 1, 1], [], []>} : vector<10x32xbf16>, vector<32x32xbf16>, vector<10x32xf32> -> vector<10x32xf32>
    %c0_58 = arith.constant 0 : index
    %c0_59 = arith.constant 0 : index
    %c0_60 = arith.constant 0 : index
    %171 = vector.load %arg15[%c0_58, %c0_59, %c0_60] : memref<2x1x32xf32, #tpu.memory_space<vmem>>, vector<1x1x32xf32>
    %172 = vector.shape_cast %171 : vector<1x1x32xf32> to vector<1x32xf32>
    %173 = vector.broadcast %172 : vector<1x32xf32> to vector<10x32xf32>
    %174 = arith.addf %170, %173 : vector<10x32xf32>
    %175 = arith.addf %174, %69 : vector<10x32xf32>
    %c0_61 = arith.constant 0 : index
    %c0_62 = arith.constant 0 : index
    %c0_63 = arith.constant 0 : index
    %176 = vector.load %arg16[%c0_61, %c0_62, %c0_63] : memref<2x1x32xf32, #tpu.memory_space<vmem>>, vector<1x1x32xf32>
    %177 = vector.shape_cast %176 : vector<1x1x32xf32> to vector<1x32xf32>
    %c0_64 = arith.constant 0 : index
    %c0_65 = arith.constant 0 : index
    %c0_66 = arith.constant 0 : index
    %178 = vector.load %arg17[%c0_64, %c0_65, %c0_66] : memref<2x1x32xf32, #tpu.memory_space<vmem>>, vector<1x1x32xf32>
    %179 = vector.shape_cast %178 : vector<1x1x32xf32> to vector<1x32xf32>
    %cst_67 = arith.constant dense<0.000000e+00> : vector<10xf32>
    %180 = vector.multi_reduction <add>, %175, %cst_67 [1] : vector<10x32xf32> to vector<10xf32>
    %181 = vector.shape_cast %180 : vector<10xf32> to vector<10x1xf32>
    %cst_68 = arith.constant 3.200000e+01 : f32
    %182 = vector.broadcast %cst_68 : f32 to vector<10x1xf32>
    %183 = arith.divf %181, %182 : vector<10x1xf32>
    %184 = vector.broadcast %183 : vector<10x1xf32> to vector<10x32xf32>
    %185 = arith.subf %175, %184 : vector<10x32xf32>
    %186 = arith.mulf %185, %185 : vector<10x32xf32>
    %cst_69 = arith.constant dense<0.000000e+00> : vector<10xf32>
    %187 = vector.multi_reduction <add>, %186, %cst_69 [1] : vector<10x32xf32> to vector<10xf32>
    %188 = vector.shape_cast %187 : vector<10xf32> to vector<10x1xf32>
    %cst_70 = arith.constant 3.200000e+01 : f32
    %189 = vector.broadcast %cst_70 : f32 to vector<10x1xf32>
    %190 = arith.divf %188, %189 : vector<10x1xf32>
    %191 = vector.broadcast %183 : vector<10x1xf32> to vector<10x32xf32>
    %192 = arith.subf %175, %191 : vector<10x32xf32>
    %cst_71 = arith.constant 9.99999996E-13 : f32
    %193 = vector.broadcast %cst_71 : f32 to vector<10x1xf32>
    %194 = arith.addf %190, %193 : vector<10x1xf32>
    %195 = math.rsqrt %194 : vector<10x1xf32>
    %196 = vector.broadcast %195 : vector<10x1xf32> to vector<10x32xf32>
    %197 = arith.mulf %192, %196 : vector<10x32xf32>
    %198 = vector.broadcast %177 : vector<1x32xf32> to vector<10x32xf32>
    %199 = arith.mulf %197, %198 : vector<10x32xf32>
    %200 = vector.broadcast %179 : vector<1x32xf32> to vector<10x32xf32>
    %201 = arith.addf %199, %200 : vector<10x32xf32>
    %202 = arith.truncf %201 : vector<10x32xf32> to vector<10x32xbf16>
    %c0_72 = arith.constant 0 : index
    %c0_73 = arith.constant 0 : index
    %c0_74 = arith.constant 0 : index
    %203 = vector.load %arg18[%c0_72, %c0_73, %c0_74] : memref<2x32x64xbf16, #tpu.memory_space<vmem>>, vector<1x32x64xbf16>
    %204 = vector.shape_cast %203 : vector<1x32x64xbf16> to vector<32x64xbf16>
    %cst_75 = arith.constant dense<0.000000e+00> : vector<10x64xf32>
    %205 = tpu.matmul %202, %204, %cst_75 {dimension_numbers = #tpu.dot_dimension_numbers<[1], [0], [0], [1], [0, 0, 1, 1], [], []>} : vector<10x32xbf16>, vector<32x64xbf16>, vector<10x64xf32> -> vector<10x64xf32>
    %c0_76 = arith.constant 0 : index
    %c0_77 = arith.constant 0 : index
    %c0_78 = arith.constant 0 : index
    %206 = vector.load %arg19[%c0_76, %c0_77, %c0_78] : memref<2x1x64xf32, #tpu.memory_space<vmem>>, vector<1x1x64xf32>
    %207 = vector.shape_cast %206 : vector<1x1x64xf32> to vector<1x64xf32>
    %208 = vector.broadcast %207 : vector<1x64xf32> to vector<10x64xf32>
    %209 = arith.addf %205, %208 : vector<10x64xf32>
    %210 = arith.mulf %209, %209 : vector<10x64xf32>
    %211 = arith.mulf %209, %210 : vector<10x64xf32>
    %cst_79 = arith.constant 4.471500e-02 : f32
    %212 = vector.broadcast %cst_79 : f32 to vector<10x64xf32>
    %213 = arith.mulf %212, %211 : vector<10x64xf32>
    %214 = arith.addf %209, %213 : vector<10x64xf32>
    %cst_80 = arith.constant 0.797884583 : f32
    %215 = vector.broadcast %cst_80 : f32 to vector<10x64xf32>
    %216 = arith.mulf %215, %214 : vector<10x64xf32>
    %217 = math.tanh %216 : vector<10x64xf32>
    %cst_81 = arith.constant 1.000000e+00 : f32
    %218 = vector.broadcast %cst_81 : f32 to vector<10x64xf32>
    %219 = arith.addf %218, %217 : vector<10x64xf32>
    %cst_82 = arith.constant 5.000000e-01 : f32
    %220 = vector.broadcast %cst_82 : f32 to vector<10x64xf32>
    %221 = arith.mulf %220, %219 : vector<10x64xf32>
    %222 = arith.mulf %209, %221 : vector<10x64xf32>
    %223 = arith.truncf %222 : vector<10x64xf32> to vector<10x64xbf16>
    %c0_83 = arith.constant 0 : index
    %c0_84 = arith.constant 0 : index
    %c0_85 = arith.constant 0 : index
    %224 = vector.load %arg20[%c0_83, %c0_84, %c0_85] : memref<2x64x32xbf16, #tpu.memory_space<vmem>>, vector<1x64x32xbf16>
    %225 = vector.shape_cast %224 : vector<1x64x32xbf16> to vector<64x32xbf16>
    %cst_86 = arith.constant dense<0.000000e+00> : vector<10x32xf32>
    %226 = tpu.matmul %223, %225, %cst_86 {dimension_numbers = #tpu.dot_dimension_numbers<[1], [0], [0], [1], [0, 0, 1, 1], [], []>} : vector<10x64xbf16>, vector<64x32xbf16>, vector<10x32xf32> -> vector<10x32xf32>
    %c0_87 = arith.constant 0 : index
    %c0_88 = arith.constant 0 : index
    %c0_89 = arith.constant 0 : index
    %227 = vector.load %arg21[%c0_87, %c0_88, %c0_89] : memref<2x1x32xf32, #tpu.memory_space<vmem>>, vector<1x1x32xf32>
    %228 = vector.shape_cast %227 : vector<1x1x32xf32> to vector<1x32xf32>
    %229 = vector.broadcast %228 : vector<1x32xf32> to vector<10x32xf32>
    %230 = arith.addf %226, %229 : vector<10x32xf32>
    %231 = arith.addf %230, %201 : vector<10x32xf32>
    %c0_90 = arith.constant 0 : index
    %c0_91 = arith.constant 0 : index
    %c0_92 = arith.constant 0 : index
    %232 = vector.load %arg22[%c0_90, %c0_91, %c0_92] : memref<2x1x32xf32, #tpu.memory_space<vmem>>, vector<1x1x32xf32>
    %233 = vector.shape_cast %232 : vector<1x1x32xf32> to vector<1x32xf32>
    %c0_93 = arith.constant 0 : index
    %c0_94 = arith.constant 0 : index
    %c0_95 = arith.constant 0 : index
    %234 = vector.load %arg23[%c0_93, %c0_94, %c0_95] : memref<2x1x32xf32, #tpu.memory_space<vmem>>, vector<1x1x32xf32>
    %235 = vector.shape_cast %234 : vector<1x1x32xf32> to vector<1x32xf32>
    %cst_96 = arith.constant dense<0.000000e+00> : vector<10xf32>
    %236 = vector.multi_reduction <add>, %231, %cst_96 [1] : vector<10x32xf32> to vector<10xf32>
    %237 = vector.shape_cast %236 : vector<10xf32> to vector<10x1xf32>
    %cst_97 = arith.constant 3.200000e+01 : f32
    %238 = vector.broadcast %cst_97 : f32 to vector<10x1xf32>
    %239 = arith.divf %237, %238 : vector<10x1xf32>
    %240 = vector.broadcast %239 : vector<10x1xf32> to vector<10x32xf32>
    %241 = arith.subf %231, %240 : vector<10x32xf32>
    %242 = arith.mulf %241, %241 : vector<10x32xf32>
    %cst_98 = arith.constant dense<0.000000e+00> : vector<10xf32>
    %243 = vector.multi_reduction <add>, %242, %cst_98 [1] : vector<10x32xf32> to vector<10xf32>
    %244 = vector.shape_cast %243 : vector<10xf32> to vector<10x1xf32>
    %cst_99 = arith.constant 3.200000e+01 : f32
    %245 = vector.broadcast %cst_99 : f32 to vector<10x1xf32>
    %246 = arith.divf %244, %245 : vector<10x1xf32>
    %247 = vector.broadcast %239 : vector<10x1xf32> to vector<10x32xf32>
    %248 = arith.subf %231, %247 : vector<10x32xf32>
    %cst_100 = arith.constant 9.99999996E-13 : f32
    %249 = vector.broadcast %cst_100 : f32 to vector<10x1xf32>
    %250 = arith.addf %246, %249 : vector<10x1xf32>
    %251 = math.rsqrt %250 : vector<10x1xf32>
    %252 = vector.broadcast %251 : vector<10x1xf32> to vector<10x32xf32>
    %253 = arith.mulf %248, %252 : vector<10x32xf32>
    %254 = vector.broadcast %233 : vector<1x32xf32> to vector<10x32xf32>
    %255 = arith.mulf %253, %254 : vector<10x32xf32>
    %256 = vector.broadcast %235 : vector<1x32xf32> to vector<10x32xf32>
    %257 = arith.addf %255, %256 : vector<10x32xf32>
    %258 = arith.truncf %257 : vector<10x32xf32> to vector<10x32xbf16>
    %c1_101 = arith.constant 1 : index
    %c0_102 = arith.constant 0 : index
    %c0_103 = arith.constant 0 : index
    %259 = vector.load %arg8[%c1_101, %c0_102, %c0_103] : memref<2x32x32xbf16, #tpu.memory_space<vmem>>, vector<1x32x32xbf16>
    %260 = vector.shape_cast %259 : vector<1x32x32xbf16> to vector<32x32xbf16>
    %cst_104 = arith.constant dense<0.000000e+00> : vector<10x32xf32>
    %261 = tpu.matmul %258, %260, %cst_104 {dimension_numbers = #tpu.dot_dimension_numbers<[1], [0], [0], [1], [0, 0, 1, 1], [], []>} : vector<10x32xbf16>, vector<32x32xbf16>, vector<10x32xf32> -> vector<10x32xf32>
    %c1_105 = arith.constant 1 : index
    %c0_106 = arith.constant 0 : index
    %c0_107 = arith.constant 0 : index
    %262 = vector.load %arg9[%c1_105, %c0_106, %c0_107] : memref<2x1x32xf32, #tpu.memory_space<vmem>>, vector<1x1x32xf32>
    %263 = vector.shape_cast %262 : vector<1x1x32xf32> to vector<1x32xf32>
    %264 = vector.broadcast %263 : vector<1x32xf32> to vector<10x32xf32>
    %265 = arith.addf %261, %264 : vector<10x32xf32>
    %cst_108 = arith.constant 0.353553385 : f32
    %266 = vector.broadcast %cst_108 : f32 to vector<10x32xf32>
    %267 = arith.mulf %265, %266 : vector<10x32xf32>
    %c1_109 = arith.constant 1 : index
    %c0_110 = arith.constant 0 : index
    %c0_111 = arith.constant 0 : index
    %268 = vector.load %arg10[%c1_109, %c0_110, %c0_111] : memref<2x32x32xbf16, #tpu.memory_space<vmem>>, vector<1x32x32xbf16>
    %269 = vector.shape_cast %268 : vector<1x32x32xbf16> to vector<32x32xbf16>
    %cst_112 = arith.constant dense<0.000000e+00> : vector<10x32xf32>
    %270 = tpu.matmul %258, %269, %cst_112 {dimension_numbers = #tpu.dot_dimension_numbers<[1], [0], [0], [1], [0, 0, 1, 1], [], []>} : vector<10x32xbf16>, vector<32x32xbf16>, vector<10x32xf32> -> vector<10x32xf32>
    %c1_113 = arith.constant 1 : index
    %c0_114 = arith.constant 0 : index
    %c0_115 = arith.constant 0 : index
    %271 = vector.load %arg11[%c1_113, %c0_114, %c0_115] : memref<2x1x32xf32, #tpu.memory_space<vmem>>, vector<1x1x32xf32>
    %272 = vector.shape_cast %271 : vector<1x1x32xf32> to vector<1x32xf32>
    %273 = vector.broadcast %272 : vector<1x32xf32> to vector<10x32xf32>
    %274 = arith.addf %270, %273 : vector<10x32xf32>
    %c1_116 = arith.constant 1 : index
    %c0_117 = arith.constant 0 : index
    %c0_118 = arith.constant 0 : index
    %275 = vector.load %arg12[%c1_116, %c0_117, %c0_118] : memref<2x32x32xbf16, #tpu.memory_space<vmem>>, vector<1x32x32xbf16>
    %276 = vector.shape_cast %275 : vector<1x32x32xbf16> to vector<32x32xbf16>
    %cst_119 = arith.constant dense<0.000000e+00> : vector<10x32xf32>
    %277 = tpu.matmul %258, %276, %cst_119 {dimension_numbers = #tpu.dot_dimension_numbers<[1], [0], [0], [1], [0, 0, 1, 1], [], []>} : vector<10x32xbf16>, vector<32x32xbf16>, vector<10x32xf32> -> vector<10x32xf32>
    %c1_120 = arith.constant 1 : index
    %c0_121 = arith.constant 0 : index
    %c0_122 = arith.constant 0 : index
    %278 = vector.load %arg13[%c1_120, %c0_121, %c0_122] : memref<2x1x32xf32, #tpu.memory_space<vmem>>, vector<1x1x32xf32>
    %279 = vector.shape_cast %278 : vector<1x1x32xf32> to vector<1x32xf32>
    %280 = vector.broadcast %279 : vector<1x32xf32> to vector<10x32xf32>
    %281 = arith.addf %277, %280 : vector<10x32xf32>
    %282 = vector.broadcast %79 : vector<1x32xf32> to vector<10x32xf32>
    %283 = arith.mulf %267, %282 : vector<10x32xf32>
    %284 = vector.broadcast %86 : vector<1x32xf32> to vector<10x32xf32>
    %285 = arith.mulf %267, %284 : vector<10x32xf32>
    %286 = vector.broadcast %93 : vector<1x32xf32> to vector<10x32xf32>
    %287 = arith.mulf %267, %286 : vector<10x32xf32>
    %288 = vector.broadcast %100 : vector<1x32xf32> to vector<10x32xf32>
    %289 = arith.mulf %267, %288 : vector<10x32xf32>
    %290 = tpu.concatenate %283, %285, %287, %289 in 0 : vector<10x32xf32>, vector<10x32xf32>, vector<10x32xf32>, vector<10x32xf32> -> vector<40x32xf32>
    %291 = arith.truncf %290 : vector<40x32xf32> to vector<40x32xbf16>
    %292 = arith.truncf %274 : vector<10x32xf32> to vector<10x32xbf16>
    %cst_123 = arith.constant dense<0.000000e+00> : vector<40x10xf32>
    %293 = tpu.matmul %291, %292, %cst_123 {dimension_numbers = #tpu.dot_dimension_numbers<[1], [1], [0], [0], [0, 0, 1, 0], [], []>} : vector<40x32xbf16>, vector<10x32xbf16>, vector<40x10xf32> -> vector<40x10xf32>
    %294 = vector.broadcast %71 : vector<1x10xf32> to vector<40x10xf32>
    %295 = arith.addf %293, %294 : vector<40x10xf32>
    %cst_124 = arith.constant dense<0xFF800000> : vector<40xf32>
    %296 = vector.multi_reduction <maximumf>, %295, %cst_124 [1] : vector<40x10xf32> to vector<40xf32>
    %297 = vector.shape_cast %296 : vector<40xf32> to vector<40x1xf32>
    %298 = vector.broadcast %297 : vector<40x1xf32> to vector<40x10xf32>
    %299 = arith.subf %295, %298 : vector<40x10xf32>
    %300 = math.exp %299 : vector<40x10xf32>
    %cst_125 = arith.constant dense<0.000000e+00> : vector<40xf32>
    %301 = vector.multi_reduction <add>, %300, %cst_125 [1] : vector<40x10xf32> to vector<40xf32>
    %302 = vector.shape_cast %301 : vector<40xf32> to vector<40x1xf32>
    %303 = tpu.reciprocal %302 {approx = true} : vector<40x1xf32> -> vector<40x1xf32>
    %304 = vector.broadcast %303 : vector<40x1xf32> to vector<40x10xf32>
    %305 = arith.mulf %300, %304 : vector<40x10xf32>
    %306 = arith.truncf %305 : vector<40x10xf32> to vector<40x10xbf16>
    %307 = arith.truncf %281 : vector<10x32xf32> to vector<10x32xbf16>
    %cst_126 = arith.constant dense<0.000000e+00> : vector<40x32xf32>
    %308 = tpu.matmul %306, %307, %cst_126 {dimension_numbers = #tpu.dot_dimension_numbers<[1], [0], [0], [1], [0, 0, 1, 1], [], []>} : vector<40x10xbf16>, vector<10x32xbf16>, vector<40x32xf32> -> vector<40x32xf32>
    %309 = vector.extract_strided_slice %308 {offsets = [0, 0], sizes = [10, 32], strides = [1, 1]} : vector<40x32xf32> to vector<10x32xf32>
    %310 = vector.broadcast %79 : vector<1x32xf32> to vector<10x32xf32>
    %311 = arith.mulf %310, %309 : vector<10x32xf32>
    %312 = vector.extract_strided_slice %308 {offsets = [10, 0], sizes = [10, 32], strides = [1, 1]} : vector<40x32xf32> to vector<10x32xf32>
    %313 = vector.broadcast %86 : vector<1x32xf32> to vector<10x32xf32>
    %314 = arith.mulf %313, %312 : vector<10x32xf32>
    %315 = arith.addf %311, %314 : vector<10x32xf32>
    %316 = vector.extract_strided_slice %308 {offsets = [20, 0], sizes = [10, 32], strides = [1, 1]} : vector<40x32xf32> to vector<10x32xf32>
    %317 = vector.broadcast %93 : vector<1x32xf32> to vector<10x32xf32>
    %318 = arith.mulf %317, %316 : vector<10x32xf32>
    %319 = arith.addf %315, %318 : vector<10x32xf32>
    %320 = vector.extract_strided_slice %308 {offsets = [30, 0], sizes = [10, 32], strides = [1, 1]} : vector<40x32xf32> to vector<10x32xf32>
    %321 = vector.broadcast %100 : vector<1x32xf32> to vector<10x32xf32>
    %322 = arith.mulf %321, %320 : vector<10x32xf32>
    %323 = arith.addf %319, %322 : vector<10x32xf32>
    %324 = arith.truncf %323 : vector<10x32xf32> to vector<10x32xbf16>
    %c1_127 = arith.constant 1 : index
    %c0_128 = arith.constant 0 : index
    %c0_129 = arith.constant 0 : index
    %325 = vector.load %arg14[%c1_127, %c0_128, %c0_129] : memref<2x32x32xbf16, #tpu.memory_space<vmem>>, vector<1x32x32xbf16>
    %326 = vector.shape_cast %325 : vector<1x32x32xbf16> to vector<32x32xbf16>
    %cst_130 = arith.constant dense<0.000000e+00> : vector<10x32xf32>
    %327 = tpu.matmul %324, %326, %cst_130 {dimension_numbers = #tpu.dot_dimension_numbers<[1], [0], [0], [1], [0, 0, 1, 1], [], []>} : vector<10x32xbf16>, vector<32x32xbf16>, vector<10x32xf32> -> vector<10x32xf32>
    %c1_131 = arith.constant 1 : index
    %c0_132 = arith.constant 0 : index
    %c0_133 = arith.constant 0 : index
    %328 = vector.load %arg15[%c1_131, %c0_132, %c0_133] : memref<2x1x32xf32, #tpu.memory_space<vmem>>, vector<1x1x32xf32>
    %329 = vector.shape_cast %328 : vector<1x1x32xf32> to vector<1x32xf32>
    %330 = vector.broadcast %329 : vector<1x32xf32> to vector<10x32xf32>
    %331 = arith.addf %327, %330 : vector<10x32xf32>
    %332 = arith.addf %331, %257 : vector<10x32xf32>
    %c1_134 = arith.constant 1 : index
    %c0_135 = arith.constant 0 : index
    %c0_136 = arith.constant 0 : index
    %333 = vector.load %arg16[%c1_134, %c0_135, %c0_136] : memref<2x1x32xf32, #tpu.memory_space<vmem>>, vector<1x1x32xf32>
    %334 = vector.shape_cast %333 : vector<1x1x32xf32> to vector<1x32xf32>
    %c1_137 = arith.constant 1 : index
    %c0_138 = arith.constant 0 : index
    %c0_139 = arith.constant 0 : index
    %335 = vector.load %arg17[%c1_137, %c0_138, %c0_139] : memref<2x1x32xf32, #tpu.memory_space<vmem>>, vector<1x1x32xf32>
    %336 = vector.shape_cast %335 : vector<1x1x32xf32> to vector<1x32xf32>
    %cst_140 = arith.constant dense<0.000000e+00> : vector<10xf32>
    %337 = vector.multi_reduction <add>, %332, %cst_140 [1] : vector<10x32xf32> to vector<10xf32>
    %338 = vector.shape_cast %337 : vector<10xf32> to vector<10x1xf32>
    %cst_141 = arith.constant 3.200000e+01 : f32
    %339 = vector.broadcast %cst_141 : f32 to vector<10x1xf32>
    %340 = arith.divf %338, %339 : vector<10x1xf32>
    %341 = vector.broadcast %340 : vector<10x1xf32> to vector<10x32xf32>
    %342 = arith.subf %332, %341 : vector<10x32xf32>
    %343 = arith.mulf %342, %342 : vector<10x32xf32>
    %cst_142 = arith.constant dense<0.000000e+00> : vector<10xf32>
    %344 = vector.multi_reduction <add>, %343, %cst_142 [1] : vector<10x32xf32> to vector<10xf32>
    %345 = vector.shape_cast %344 : vector<10xf32> to vector<10x1xf32>
    %cst_143 = arith.constant 3.200000e+01 : f32
    %346 = vector.broadcast %cst_143 : f32 to vector<10x1xf32>
    %347 = arith.divf %345, %346 : vector<10x1xf32>
    %348 = vector.broadcast %340 : vector<10x1xf32> to vector<10x32xf32>
    %349 = arith.subf %332, %348 : vector<10x32xf32>
    %cst_144 = arith.constant 9.99999996E-13 : f32
    %350 = vector.broadcast %cst_144 : f32 to vector<10x1xf32>
    %351 = arith.addf %347, %350 : vector<10x1xf32>
    %352 = math.rsqrt %351 : vector<10x1xf32>
    %353 = vector.broadcast %352 : vector<10x1xf32> to vector<10x32xf32>
    %354 = arith.mulf %349, %353 : vector<10x32xf32>
    %355 = vector.broadcast %334 : vector<1x32xf32> to vector<10x32xf32>
    %356 = arith.mulf %354, %355 : vector<10x32xf32>
    %357 = vector.broadcast %336 : vector<1x32xf32> to vector<10x32xf32>
    %358 = arith.addf %356, %357 : vector<10x32xf32>
    %359 = arith.truncf %358 : vector<10x32xf32> to vector<10x32xbf16>
    %c1_145 = arith.constant 1 : index
    %c0_146 = arith.constant 0 : index
    %c0_147 = arith.constant 0 : index
    %360 = vector.load %arg18[%c1_145, %c0_146, %c0_147] : memref<2x32x64xbf16, #tpu.memory_space<vmem>>, vector<1x32x64xbf16>
    %361 = vector.shape_cast %360 : vector<1x32x64xbf16> to vector<32x64xbf16>
    %cst_148 = arith.constant dense<0.000000e+00> : vector<10x64xf32>
    %362 = tpu.matmul %359, %361, %cst_148 {dimension_numbers = #tpu.dot_dimension_numbers<[1], [0], [0], [1], [0, 0, 1, 1], [], []>} : vector<10x32xbf16>, vector<32x64xbf16>, vector<10x64xf32> -> vector<10x64xf32>
    %c1_149 = arith.constant 1 : index
    %c0_150 = arith.constant 0 : index
    %c0_151 = arith.constant 0 : index
    %363 = vector.load %arg19[%c1_149, %c0_150, %c0_151] : memref<2x1x64xf32, #tpu.memory_space<vmem>>, vector<1x1x64xf32>
    %364 = vector.shape_cast %363 : vector<1x1x64xf32> to vector<1x64xf32>
    %365 = vector.broadcast %364 : vector<1x64xf32> to vector<10x64xf32>
    %366 = arith.addf %362, %365 : vector<10x64xf32>
    %367 = arith.mulf %366, %366 : vector<10x64xf32>
    %368 = arith.mulf %366, %367 : vector<10x64xf32>
    %cst_152 = arith.constant 4.471500e-02 : f32
    %369 = vector.broadcast %cst_152 : f32 to vector<10x64xf32>
    %370 = arith.mulf %369, %368 : vector<10x64xf32>
    %371 = arith.addf %366, %370 : vector<10x64xf32>
    %cst_153 = arith.constant 0.797884583 : f32
    %372 = vector.broadcast %cst_153 : f32 to vector<10x64xf32>
    %373 = arith.mulf %372, %371 : vector<10x64xf32>
    %374 = math.tanh %373 : vector<10x64xf32>
    %cst_154 = arith.constant 1.000000e+00 : f32
    %375 = vector.broadcast %cst_154 : f32 to vector<10x64xf32>
    %376 = arith.addf %375, %374 : vector<10x64xf32>
    %cst_155 = arith.constant 5.000000e-01 : f32
    %377 = vector.broadcast %cst_155 : f32 to vector<10x64xf32>
    %378 = arith.mulf %377, %376 : vector<10x64xf32>
    %379 = arith.mulf %366, %378 : vector<10x64xf32>
    %380 = arith.truncf %379 : vector<10x64xf32> to vector<10x64xbf16>
    %c1_156 = arith.constant 1 : index
    %c0_157 = arith.constant 0 : index
    %c0_158 = arith.constant 0 : index
    %381 = vector.load %arg20[%c1_156, %c0_157, %c0_158] : memref<2x64x32xbf16, #tpu.memory_space<vmem>>, vector<1x64x32xbf16>
    %382 = vector.shape_cast %381 : vector<1x64x32xbf16> to vector<64x32xbf16>
    %cst_159 = arith.constant dense<0.000000e+00> : vector<10x32xf32>
    %383 = tpu.matmul %380, %382, %cst_159 {dimension_numbers = #tpu.dot_dimension_numbers<[1], [0], [0], [1], [0, 0, 1, 1], [], []>} : vector<10x64xbf16>, vector<64x32xbf16>, vector<10x32xf32> -> vector<10x32xf32>
    %c1_160 = arith.constant 1 : index
    %c0_161 = arith.constant 0 : index
    %c0_162 = arith.constant 0 : index
    %384 = vector.load %arg21[%c1_160, %c0_161, %c0_162] : memref<2x1x32xf32, #tpu.memory_space<vmem>>, vector<1x1x32xf32>
    %385 = vector.shape_cast %384 : vector<1x1x32xf32> to vector<1x32xf32>
    %386 = vector.broadcast %385 : vector<1x32xf32> to vector<10x32xf32>
    %387 = arith.addf %383, %386 : vector<10x32xf32>
    %388 = arith.addf %387, %358 : vector<10x32xf32>
    %c1_163 = arith.constant 1 : index
    %c0_164 = arith.constant 0 : index
    %c0_165 = arith.constant 0 : index
    %389 = vector.load %arg22[%c1_163, %c0_164, %c0_165] : memref<2x1x32xf32, #tpu.memory_space<vmem>>, vector<1x1x32xf32>
    %390 = vector.shape_cast %389 : vector<1x1x32xf32> to vector<1x32xf32>
    %c1_166 = arith.constant 1 : index
    %c0_167 = arith.constant 0 : index
    %c0_168 = arith.constant 0 : index
    %391 = vector.load %arg23[%c1_166, %c0_167, %c0_168] : memref<2x1x32xf32, #tpu.memory_space<vmem>>, vector<1x1x32xf32>
    %392 = vector.shape_cast %391 : vector<1x1x32xf32> to vector<1x32xf32>
    %cst_169 = arith.constant dense<0.000000e+00> : vector<10xf32>
    %393 = vector.multi_reduction <add>, %388, %cst_169 [1] : vector<10x32xf32> to vector<10xf32>
    %394 = vector.shape_cast %393 : vector<10xf32> to vector<10x1xf32>
    %cst_170 = arith.constant 3.200000e+01 : f32
    %395 = vector.broadcast %cst_170 : f32 to vector<10x1xf32>
    %396 = arith.divf %394, %395 : vector<10x1xf32>
    %397 = vector.broadcast %396 : vector<10x1xf32> to vector<10x32xf32>
    %398 = arith.subf %388, %397 : vector<10x32xf32>
    %399 = arith.mulf %398, %398 : vector<10x32xf32>
    %cst_171 = arith.constant dense<0.000000e+00> : vector<10xf32>
    %400 = vector.multi_reduction <add>, %399, %cst_171 [1] : vector<10x32xf32> to vector<10xf32>
    %401 = vector.shape_cast %400 : vector<10xf32> to vector<10x1xf32>
    %cst_172 = arith.constant 3.200000e+01 : f32
    %402 = vector.broadcast %cst_172 : f32 to vector<10x1xf32>
    %403 = arith.divf %401, %402 : vector<10x1xf32>
    %404 = vector.broadcast %396 : vector<10x1xf32> to vector<10x32xf32>
    %405 = arith.subf %388, %404 : vector<10x32xf32>
    %cst_173 = arith.constant 9.99999996E-13 : f32
    %406 = vector.broadcast %cst_173 : f32 to vector<10x1xf32>
    %407 = arith.addf %403, %406 : vector<10x1xf32>
    %408 = math.rsqrt %407 : vector<10x1xf32>
    %409 = vector.broadcast %408 : vector<10x1xf32> to vector<10x32xf32>
    %410 = arith.mulf %405, %409 : vector<10x32xf32>
    %411 = vector.broadcast %390 : vector<1x32xf32> to vector<10x32xf32>
    %412 = arith.mulf %410, %411 : vector<10x32xf32>
    %413 = vector.broadcast %392 : vector<1x32xf32> to vector<10x32xf32>
    %414 = arith.addf %412, %413 : vector<10x32xf32>
    %415 = arith.truncf %414 : vector<10x32xf32> to vector<10x32xbf16>
    %c0_174 = arith.constant 0 : index
    %c0_175 = arith.constant 0 : index
    %416 = vector.load %arg24[%c0_174, %c0_175] : memref<32x128xbf16, #tpu.memory_space<vmem>>, vector<32x128xbf16>
    %cst_176 = arith.constant dense<0.000000e+00> : vector<10x128xf32>
    %417 = tpu.matmul %415, %416, %cst_176 {dimension_numbers = #tpu.dot_dimension_numbers<[1], [0], [0], [1], [0, 0, 1, 1], [], []>} : vector<10x32xbf16>, vector<32x128xbf16>, vector<10x128xf32> -> vector<10x128xf32>
    %c0_177 = arith.constant 0 : index
    %c0_178 = arith.constant 0 : index
    %418 = vector.load %arg25[%c0_177, %c0_178] : memref<1x128xf32, #tpu.memory_space<vmem>>, vector<1x128xf32>
    %419 = vector.broadcast %418 : vector<1x128xf32> to vector<10x128xf32>
    %420 = arith.addf %417, %419 : vector<10x128xf32>
    %421 = arith.truncf %420 : vector<10x128xf32> to vector<10x128xbf16>
    %c0_179 = arith.constant 0 : index
    %c0_180 = arith.constant 0 : index
    %c0_181 = arith.constant 0 : index
    %422 = vector.load %arg26[%c0_179, %c0_180, %c0_181] : memref<1x10x128xbf16, #tpu.memory_space<vmem>>, vector<1x10x128xbf16>
    %423 = vector.shape_cast %422 : vector<1x10x128xbf16> to vector<10x128xbf16>
    %424 = vector.shape_cast %421 : vector<10x128xbf16> to vector<1x10x128xbf16>
    tpu.vector_store %arg26[%c0_179, %c0_180, %c0_181], %424 {strides = array<i32>} : memref<1x10x128xbf16, #tpu.memory_space<vmem>>, vector<1x10x128xbf16>,
    return
  }
  func.func @transform_0(%arg0: i32, %arg1: memref<2x10xi32, #tpu.memory_space<smem>>) -> (i32, i32, i32) {
    %c0_i32 = arith.constant 0 : i32
    %c0_i32_0 = arith.constant 0 : i32
    %c0_i32_1 = arith.constant 0 : i32
    return %arg0, %c0_i32, %c0_i32_0 : i32, i32, i32
  }
  func.func @transform_1(%arg0: i32, %arg1: memref<2x10xi32, #tpu.memory_space<smem>>) -> (i32, i32) {
    %c0_i32 = arith.constant 0 : i32
    %c0_i32_0 = arith.constant 0 : i32
    %c0_i32_1 = arith.constant 0 : i32
    return %c0_i32, %c0_i32_0 : i32, i32
  }
  func.func @transform_2(%arg0: i32, %arg1: memref<2x10xi32, #tpu.memory_space<smem>>) -> (i32, i32) {
    %c0_i32 = arith.constant 0 : i32
    %c0_i32_0 = arith.constant 0 : i32
    %c0_i32_1 = arith.constant 0 : i32
    return %c0_i32, %c0_i32_0 : i32, i32
  }
  func.func @transform_3(%arg0: i32, %arg1: memref<2x10xi32, #tpu.memory_space<smem>>) -> (i32, i32) {
    %c0_i32 = arith.constant 0 : i32
    %c0_i32_0 = arith.constant 0 : i32
    %c0_i32_1 = arith.constant 0 : i32
    return %c0_i32, %c0_i32_0 : i32, i32
  }
  func.func @transform_4(%arg0: i32, %arg1: memref<2x10xi32, #tpu.memory_space<smem>>) -> (i32, i32) {
    %c0_i32 = arith.constant 0 : i32
    %c0_i32_0 = arith.constant 0 : i32
    %c0_i32_1 = arith.constant 0 : i32
    return %c0_i32, %c0_i32_0 : i32, i32
  }
  func.func @transform_5(%arg0: i32, %arg1: memref<2x10xi32, #tpu.memory_space<smem>>) -> (i32, i32) {
    %c0_i32 = arith.constant 0 : i32
    %c0_i32_0 = arith.constant 0 : i32
    %c0_i32_1 = arith.constant 0 : i32
    return %c0_i32, %c0_i32_0 : i32, i32
  }
  func.func @transform_6(%arg0: i32, %arg1: memref<2x10xi32, #tpu.memory_space<smem>>) -> (i32, i32, i32) {
    %c0_i32 = arith.constant 0 : i32
    %c0_i32_0 = arith.constant 0 : i32
    %c0_i32_1 = arith.constant 0 : i32
    %c0_i32_2 = arith.constant 0 : i32
    return %c0_i32, %c0_i32_0, %c0_i32_1 : i32, i32, i32
  }
  func.func @transform_7(%arg0: i32, %arg1: memref<2x10xi32, #tpu.memory_space<smem>>) -> (i32, i32, i32) {
    %c0_i32 = arith.constant 0 : i32
    %c0_i32_0 = arith.constant 0 : i32
    %c0_i32_1 = arith.constant 0 : i32
    %c0_i32_2 = arith.constant 0 : i32
    return %c0_i32, %c0_i32_0, %c0_i32_1 : i32, i32, i32
  }
  func.func @transform_8(%arg0: i32, %arg1: memref<2x10xi32, #tpu.memory_space<smem>>) -> (i32, i32, i32) {
    %c0_i32 = arith.constant 0 : i32
    %c0_i32_0 = arith.constant 0 : i32
    %c0_i32_1 = arith.constant 0 : i32
    %c0_i32_2 = arith.constant 0 : i32
    return %c0_i32, %c0_i32_0, %c0_i32_1 : i32, i32, i32
  }
  func.func @transform_9(%arg0: i32, %arg1: memref<2x10xi32, #tpu.memory_space<smem>>) -> (i32, i32, i32) {
    %c0_i32 = arith.constant 0 : i32
    %c0_i32_0 = arith.constant 0 : i32
    %c0_i32_1 = arith.constant 0 : i32
    %c0_i32_2 = arith.constant 0 : i32
    return %c0_i32, %c0_i32_0, %c0_i32_1 : i32, i32, i32
  }
  func.func @transform_10(%arg0: i32, %arg1: memref<2x10xi32, #tpu.memory_space<smem>>) -> (i32, i32, i32) {
    %c0_i32 = arith.constant 0 : i32
    %c0_i32_0 = arith.constant 0 : i32
    %c0_i32_1 = arith.constant 0 : i32
    %c0_i32_2 = arith.constant 0 : i32
    return %c0_i32, %c0_i32_0, %c0_i32_1 : i32, i32, i32
  }
  func.func @transform_11(%arg0: i32, %arg1: memref<2x10xi32, #tpu.memory_space<smem>>) -> (i32, i32, i32) {
    %c0_i32 = arith.constant 0 : i32
    %c0_i32_0 = arith.constant 0 : i32
    %c0_i32_1 = arith.constant 0 : i32
    %c0_i32_2 = arith.constant 0 : i32
    return %c0_i32, %c0_i32_0, %c0_i32_1 : i32, i32, i32
  }
  func.func @transform_12(%arg0: i32, %arg1: memref<2x10xi32, #tpu.memory_space<smem>>) -> (i32, i32, i32) {
    %c0_i32 = arith.constant 0 : i32
    %c0_i32_0 = arith.constant 0 : i32
    %c0_i32_1 = arith.constant 0 : i32
    %c0_i32_2 = arith.constant 0 : i32
    return %c0_i32, %c0_i32_0, %c0_i32_1 : i32, i32, i32
  }
  func.func @transform_13(%arg0: i32, %arg1: memref<2x10xi32, #tpu.memory_space<smem>>) -> (i32, i32, i32) {
    %c0_i32 = arith.constant 0 : i32
    %c0_i32_0 = arith.constant 0 : i32
    %c0_i32_1 = arith.constant 0 : i32
    %c0_i32_2 = arith.constant 0 : i32
    return %c0_i32, %c0_i32_0, %c0_i32_1 : i32, i32, i32
  }
  func.func @transform_14(%arg0: i32, %arg1: memref<2x10xi32, #tpu.memory_space<smem>>) -> (i32, i32, i32) {
    %c0_i32 = arith.constant 0 : i32
    %c0_i32_0 = arith.constant 0 : i32
    %c0_i32_1 = arith.constant 0 : i32
    %c0_i32_2 = arith.constant 0 : i32
    return %c0_i32, %c0_i32_0, %c0_i32_1 : i32, i32, i32
  }
  func.func @transform_15(%arg0: i32, %arg1: memref<2x10xi32, #tpu.memory_space<smem>>) -> (i32, i32, i32) {
    %c0_i32 = arith.constant 0 : i32
    %c0_i32_0 = arith.constant 0 : i32
    %c0_i32_1 = arith.constant 0 : i32
    %c0_i32_2 = arith.constant 0 : i32
    return %c0_i32, %c0_i32_0, %c0_i32_1 : i32, i32, i32
  }
  func.func @transform_16(%arg0: i32, %arg1: memref<2x10xi32, #tpu.memory_space<smem>>) -> (i32, i32, i32) {
    %c0_i32 = arith.constant 0 : i32
    %c0_i32_0 = arith.constant 0 : i32
    %c0_i32_1 = arith.constant 0 : i32
    %c0_i32_2 = arith.constant 0 : i32
    return %c0_i32, %c0_i32_0, %c0_i32_1 : i32, i32, i32
  }
  func.func @transform_17(%arg0: i32, %arg1: memref<2x10xi32, #tpu.memory_space<smem>>) -> (i32, i32, i32) {
    %c0_i32 = arith.constant 0 : i32
    %c0_i32_0 = arith.constant 0 : i32
    %c0_i32_1 = arith.constant 0 : i32
    %c0_i32_2 = arith.constant 0 : i32
    return %c0_i32, %c0_i32_0, %c0_i32_1 : i32, i32, i32
  }
  func.func @transform_18(%arg0: i32, %arg1: memref<2x10xi32, #tpu.memory_space<smem>>) -> (i32, i32, i32) {
    %c0_i32 = arith.constant 0 : i32
    %c0_i32_0 = arith.constant 0 : i32
    %c0_i32_1 = arith.constant 0 : i32
    %c0_i32_2 = arith.constant 0 : i32
    return %c0_i32, %c0_i32_0, %c0_i32_1 : i32, i32, i32
  }
  func.func @transform_19(%arg0: i32, %arg1: memref<2x10xi32, #tpu.memory_space<smem>>) -> (i32, i32, i32) {
    %c0_i32 = arith.constant 0 : i32
    %c0_i32_0 = arith.constant 0 : i32
    %c0_i32_1 = arith.constant 0 : i32
    %c0_i32_2 = arith.constant 0 : i32
    return %c0_i32, %c0_i32_0, %c0_i32_1 : i32, i32, i32
  }
  func.func @transform_20(%arg0: i32, %arg1: memref<2x10xi32, #tpu.memory_space<smem>>) -> (i32, i32, i32) {
    %c0_i32 = arith.constant 0 : i32
    %c0_i32_0 = arith.constant 0 : i32
    %c0_i32_1 = arith.constant 0 : i32
    %c0_i32_2 = arith.constant 0 : i32
    return %c0_i32, %c0_i32_0, %c0_i32_1 : i32, i32, i32
  }
  func.func @transform_21(%arg0: i32, %arg1: memref<2x10xi32, #tpu.memory_space<smem>>) -> (i32, i32, i32) {
    %c0_i32 = arith.constant 0 : i32
    %c0_i32_0 = arith.constant 0 : i32
    %c0_i32_1 = arith.constant 0 : i32
    %c0_i32_2 = arith.constant 0 : i32
    return %c0_i32, %c0_i32_0, %c0_i32_1 : i32, i32, i32
  }
  func.func @transform_22(%arg0: i32, %arg1: memref<2x10xi32, #tpu.memory_space<smem>>) -> (i32, i32) {
    %c0_i32 = arith.constant 0 : i32
    %c0_i32_0 = arith.constant 0 : i32
    %c0_i32_1 = arith.constant 0 : i32
    return %c0_i32, %c0_i32_0 : i32, i32
  }
  func.func @transform_23(%arg0: i32, %arg1: memref<2x10xi32, #tpu.memory_space<smem>>) -> (i32, i32) {
    %c0_i32 = arith.constant 0 : i32
    %c0_i32_0 = arith.constant 0 : i32
    %c0_i32_1 = arith.constant 0 : i32
    return %c0_i32, %c0_i32_0 : i32, i32
  }
  func.func @transform_24(%arg0: i32, %arg1: memref<2x10xi32, #tpu.memory_space<smem>>) -> (i32, i32, i32) {
    %c0_i32 = arith.constant 0 : i32
    %c0_i32_0 = arith.constant 0 : i32
    %c0_i32_1 = arith.constant 0 : i32
    return %arg0, %c0_i32, %c0_i32_0 : i32, i32, i32
  }
}

</mosaic_0001>

<bundles_post_ra>
// kernel: bert_char_segmentor_forward.1
= control target key start
LH: loop header
LB: loop body
LE: loop exit
PB: predicated region body
PF: predicated region fallthrough
CT: control target
= control target key end

     0   :  { %s3769_s0 = inlined_call_operand.vmem [shape: s32[2,10], index: 0, kind: input, shape index: {}]   ;;  %s3770_s1 = inlined_call_operand.vmem [shape: f32[2,1,10], index: 1, kind: input, shape index: {}]   ;;  %s3771_s2 = inlined_call_operand.vmem [shape: f32[128,32], index: 2, kind: input, shape index: {}]   ;;  %s3772_s3 = inlined_call_operand.vmem [shape: f32[16,32], index: 3, kind: input, shape index: {}]   ;;  %s3773_s4 = inlined_call_operand.vmem [shape: f32[2,32], index: 4, kind: input, shape index: {}]   ;;  %s3774_s5 = inlined_call_operand.vmem [shape: f32[1,32], index: 5, kind: input, shape index: {}]   ;;  %s3775_s6 = inlined_call_operand.vmem [shape: f32[1,32], index: 6, kind: input, shape index: {}]   ;;  %s3776_s7 = inlined_call_operand.vmem [shape: bf16[2,32,32], index: 7, kind: input, shape index: {}]   ;;  %s3777_s8 = inlined_call_operand.vmem [shape: f32[2,1,32], index: 8, kind: input, shape index: {}]   ;;  %s3778_s9 = inlined_call_operand.vmem [shape: bf16[2,32,32], index: 9, kind: input, shape index: {}]   ;;  %s3779_s10 = inlined_call_operand.vmem [shape: f32[2,1,32], index: 10, kind: input, shape index: {}]   ;;  %s3780_s11 = inlined_call_operand.vmem [shape: bf16[2,32,32], index: 11, kind: input, shape index: {}]   ;;  %s3781_s12 = inlined_call_operand.vmem [shape: f32[2,1,32], index: 12, kind: input, shape index: {}]   ;;  %s3782_s13 = inlined_call_operand.vmem [shape: bf16[2,32,32], index: 13, kind: input, shape index: {}]   ;;  %s3783_s14 = inlined_call_operand.vmem [shape: f32[2,1,32], index: 14, kind: input, shape index: {}]   ;;  %s3784_s15 = inlined_call_operand.vmem [shape: f32[2,1,32], index: 15, kind: input, shape index: {}]   ;;  %s3785_s16 = inlined_call_operand.vmem [shape: f32[2,1,32], index: 16, kind: input, shape index: {}]   ;;  %s3786_s17 = inlined_call_operand.vmem [shape: bf16[2,32,64], index: 17, kind: input, shape index: {}]   ;;  %s3787_s18 = inlined_call_operand.vmem [shape: f32[2,1,64], index: 18, kind: input, shape index: {}]   ;;  %s3788_s19 = inlined_call_operand.vmem [shape: bf16[2,64,32], index: 19, kind: input, shape index: {}]   ;;  %s3789_s20 = inlined_call_operand.vmem [shape: f32[2,1,32], index: 20, kind: input, shape index: {}]   ;;  %s3790_s21 = inlined_call_operand.vmem [shape: f32[2,1,32], index: 21, kind: input, shape index: {}]   ;;  %s3791_s22 = inlined_call_operand.vmem [shape: f32[2,1,32], index: 22, kind: input, shape index: {}]   ;;  %s3792_s23 = inlined_call_operand.vmem [shape: bf16[32,128], index: 23, kind: input, shape index: {}]   ;;  %s3793_s24 = inlined_call_operand.vmem [shape: f32[1,128], index: 24, kind: input, shape index: {}]   ;;  %s3794_s25 = inlined_call_operand.vmem [shape: bf16[2,10,128], index: 25, kind: output, shape index: {}]  }
   0x1   :  { %3806 = sst [smem:[#allocation6_spill]] %s3769_s0 }
   0x2   :  { %3807 = sst [smem:[#allocation7_spill]] %s3770_s1 }
   0x3   :  { %3808 = sst [smem:[#allocation8_spill]] %s3771_s2 }
   0x4   :  { %3809 = sst [smem:[#allocation9_spill]] %s3772_s3 }
   0x5   :  { %3810 = sst [smem:[#allocation10_spill]] %s3773_s4 }
   0x6   :  { %3811 = sst [smem:[#allocation11_spill]] %s3774_s5 }
   0x7   :  { %3812 = sst [smem:[#allocation12_spill]] %s3775_s6  ;;  %s3823_s6 = sld [smem:[#allocation6_spill]] }
   0x8   :  { %3813 = sst [smem:[#allocation13_spill]] %s3776_s7 }
   0x9   :  { %3814 = sst [smem:[#allocation14_spill]] %s3777_s8 }
   0xa   :  { %3815 = sst [smem:[#allocation15_spill]] %s3778_s9 }
   0xb   :  { %3816 = sst [smem:[#allocation16_spill]] %s3787_s18 }
   0xc   :  { %3817 = sst [smem:[#allocation17_spill]] %s3789_s20 }
   0xd   :  { %3818 = sst [smem:[#allocation18_spill]] %s3790_s21  ;;  %s30_s18 = sshll.u32 %s3823_s6, 4  ;;  %s31_s18 = int_to_ptr.vmem [resolvable:$true] %s30_s18 }
   0xe   :  { %3819 = sst [smem:[#allocation19_spill]] %s3791_s22  ;;  %s3125_s30 = scalar_lea.vmem %s31_s18, 32 }
   0xf   :  { %3820 = sst [smem:[#allocation20_spill]] %s3792_s23  ;;  %p3126_p0 = scmp.ne.s32.totalorder %s31_s18, %s3125_s30 }
  0x10   :  { %3821 = sst [smem:[#allocation21_spill]] %s3793_s24  ;;  %p3130_p1 = scmp.lt.s32.totalorder %s31_s18, %s31_s18 }
  0x11   :  { %3822 = sst [smem:[#allocation22_spill]] %s3794_s25  ;;  %p3131_p2 = scmp.lt.s32.totalorder %s3125_s30, %s3125_s30 }
  0x13   :  { %p3132_p3 = por %p3131_p2, %p3130_p1 }
  0x15   :  { %p3133_p4 = pnand %p3132_p3, %p3126_p0 }
  0x17   :  { %3136 = shalt.err (!%p3133_p4)  }
  0x18   :  { %s3147_s7 = smov [#allocation3]  }
  0x19   :  { %33 = dma.vmem_to_smem %s31_s18, 32, %s3147_s7, [#allocation2] }
  0x1a   :  { %3141 = dma.done.wait [#allocation2], 32 }
  0x1b   :  { %3142 = vsyncadd [#allocation2], 4294967264 }
  0x1c   :  { %35 = sfence }
  0x1d   :  { %s3283_s3 = smov 0  }
  0x1e LB: > { %3824 = sst [smem:[#allocation5_spill]] %s3145_s3  ;;  %s3289_s26 = sadd.s32 4294967295, %s3145_s3   ;;  %s3145_s3 = sphi %s3283_s3, %s41_s3  }
  0x1f   : > { %p2656_p5 = scmp.ge.s32.totalorder %s3145_s3, 1  ;;  %p667_p6 = scmp.lt.s32.totalorder %s3145_s3, 3 }
  0x21   : > { %p668_p7 = pnand %p2656_p5, %p667_p6 }
  0x22   : > { %s3294_s18 = sshll.u32 (!%p668_p7), %s3289_s26, 7  ;;  %vm804_vm0 = vcmask (!%p668_p7), 1040384   ;;  %vm806_vm1 = vcmask (!%p668_p7), 1041408   ;;  %s3825_s25 = sld [smem:[#allocation8_spill]] (!%p668_p7)  ;;  %vm808_vm2 = vcmask (!%p668_p7), 1042432   ;;  %vm810_vm3 = vcmask (!%p668_p7), 1043456  }
  0x23   : > { %671 = sbr.rel (%p668_p7) target bundleno = 5219 (0x1463), region = 116  ;;  %s741_s1 = sld [smem:[#allocation3 + %s3294_s18]] (!%p668_p7)  ;;  %vm812_vm4 = vcmask (!%p668_p7), 1044480   ;;  %vm814_vm5 = vcmask (!%p668_p7), 1045504   ;;  %vm816_vm6 = vcmask (!%p668_p7), 1046528   ;;  %vm832_vm7 = vcmask (!%p668_p7), 261120  }
  0x24   : > { %s744_s8 = sadd.s32 (!%p668_p7), 1, %s3294_s18  ;;  %s748_s4 = sadd.s32 (!%p668_p7), 2, %s3294_s18  ;;  %vm836_vm8 = vcmask (!%p668_p7), 254976   ;;  %v3148_v47 = vmov (!%p668_p7), 0.0   ;;  %vm3149_vm9 = vmmov (!%p668_p7), 0  }
  0x25   : > { %s745_s27 = sld [smem:[#allocation3 + %s744_s8]] (!%p668_p7)  ;;  %s752_s9 = sadd.s32 (!%p668_p7), 3, %s3294_s18  ;;  %2848 = vmatprep.subr.bf16.mxu0 (!%p668_p7), %v3148_v47  ;;  %2856 = vmatprep.subr.bf16.mxu1 (!%p668_p7), %v3148_v47 }
  0x26   : > { %s749_s28 = sld [smem:[#allocation3 + %s748_s4]] (!%p668_p7)  ;;  %s756_s0 = sadd.s32 (!%p668_p7), 4, %s3294_s18  ;;  %2852 = vmatprep.mubr.msk.bf16.mxu0 (!%p668_p7), %vm3149_vm9, %v3148_v47  ;;  %2860 = vmatprep.mubr.msk.bf16.mxu1 (!%p668_p7), %vm3149_vm9, %v3148_v47 }
  0x27   : > { %s753_s5 = sld [smem:[#allocation3 + %s752_s9]] (!%p668_p7)  ;;  %s760_s2 = sadd.s32 (!%p668_p7), 5, %s3294_s18 }
  0x28   : > { %s757_s29 = sld [smem:[#allocation3 + %s756_s0]] (!%p668_p7)  ;;  %s764_s30 = sadd.s32 (!%p668_p7), 6, %s3294_s18 }
  0x29   : > { %s761_s6 = sld [smem:[#allocation3 + %s760_s2]] (!%p668_p7)  ;;  %s742_s24 = scalar_lea.vmem (!%p668_p7), %s3825_s25, %s741_s1 }
  0x2a   : > { %s765_s23 = sld [smem:[#allocation3 + %s764_s30]]  ;;  %v743_v0 = vld [vmem:[%s742_s24] sm:$0x1]  ;;  %s768_s21 = sadd.s32 7, %s3294_s18 }
  0x2b   : > { %s746_s4 = scalar_lea.vmem %s3825_s25, %s745_s27  ;;  %s769_s20 = sld [smem:[#allocation3 + %s768_s21]] }
  0x2c   : > { %v747_v1 = vld [vmem:[%s746_s4] sm:$0x1]  ;;  %s750_s2 = scalar_lea.vmem %s3825_s25, %s749_s28  ;;  %s772_s24 = sadd.s32 8, %s3294_s18 }
  0x2d   : > { %v751_v2 = vld [vmem:[%s750_s2] sm:$0x1]  ;;  %s754_s30 = scalar_lea.vmem %s3825_s25, %s753_s5  ;;  %v781_v3 = vrot.slane %v747_v1, 7  ;;  %s773_s8 = sld [smem:[#allocation3 + %s772_s24]] }
  0x2e   : > { %v755_v4 = vld [vmem:[%s754_s30] sm:$0x1]  ;;  %s758_s7 = scalar_lea.vmem %s3825_s25, %s757_s29  ;;  %v784_v5 = vrot.slane %v751_v2, 6  ;;  %s776_s28 = sadd.s32 9, %s3294_s18 }
  0x2f   : > { %v759_v6 = vld [vmem:[%s758_s7] sm:$0x1]  ;;  %s762_s21 = scalar_lea.vmem %s3825_s25, %s761_s6  ;;  %v787_v7 = vrot.slane %v755_v4, 5  ;;  %v805_v8 = vsel %vm804_vm0, %v743_v0, %v781_v3  ;;  %s777_s29 = sld [smem:[#allocation3 + %s776_s28]]  ;;  %v3032_v4 = vld [vmem:[%s3780_s11 + $0x8] sm:$0xff]  }
  0x30   : > { %v763_v9 = vld [vmem:[%s762_s21] sm:$0x1]  ;;  %s766_s2 = scalar_lea.vmem %s3825_s25, %s765_s23  ;;  %v790_v10 = vrot.slane %v759_v6, 4  ;;  %v807_v11 = vsel %vm806_vm1, %v805_v8, %v784_v5  ;;  %s3826_s30 = sld [smem:[#allocation9_spill]]  ;;  %v878_v5 = vlaneseq }
  0x31   : > { %v767_v12 = vld [vmem:[%s766_s2] sm:$0x1]  ;;  %v793_v13 = vrot.slane %v763_v9, 3  ;;  %v809_v14 = vsel %vm808_vm2, %v807_v11, %v787_v7  ;;  %s770_s1 = scalar_lea.vmem %s3825_s25, %s769_s20  ;;  %s3827_s27 = sld [smem:[#allocation10_spill]] }
  0x32   : > { %v796_v15 = vrot.slane %v767_v12, 2  ;;  %v811_v16 = vsel %vm810_vm3, %v809_v14, %v790_v10  ;;  %v771_v17 = vld [vmem:[%s770_s1] sm:$0x1]  ;;  %s3829_s1 = sld [smem:[#allocation15_spill]]  ;;  %s3830_s20 = sld [smem:[#allocation11_spill]]  ;;  %v879_v6 = vand.u32 127, %v878_v5 }
  0x33   : > { %v813_v18 = vsel %vm812_vm4, %v811_v16, %v793_v13  ;;  %v799_v19 = vrot.slane %v771_v17, 1  ;;  %s774_s4 = scalar_lea.vmem %s3825_s25, %s773_s8  ;;  %s3831_s21 = sld [smem:[#allocation12_spill]]  ;;  %v3031_v2 = vld [vmem:[%s3780_s11] sm:$0xff]  }
  0x34   : > { %v815_v20 = vsel %vm814_vm5, %v813_v18, %v796_v15  ;;  %v775_v23 = vld [vmem:[%s774_s4] sm:$0x1]  ;;  %vm885_vm10 = vcmp.ge.s32.totalorder %v879_v6, 8  ;;  %vm886_vm11 = vcmp.lt.s32.totalorder %v879_v6, 16  ;;  %vm890_vm12 = vcmp.ge.s32.totalorder %v879_v6, 16  ;;  %s3832_s6 = sld [smem:[#allocation14_spill]] }
  0x35   : > { %v817_v24 = vsel %vm816_vm6, %v815_v20, %v799_v19  ;;  %s778_s28 = scalar_lea.vmem %s3825_s25, %s777_s29  ;;  %s3828_s29 = sld [smem:[#allocation13_spill]]  ;;  %vm891_vm13 = vcmp.lt.s32.totalorder %v879_v6, 24  ;;  %vm895_vm14 = vcmp.ge.s32.totalorder %v879_v6, 24  ;;  %vm896_vm15 = vcmp.lt.s32.totalorder %v879_v6, 32  ;;  %v2671_v11 = vld [vmem:[%s3779_s10] ss:$0 sm:$0xff] }
  0x36   : > { %v819_v21 = vld [vmem:[%s3826_s30] sm:$0xff]  ;;  %v820_v25 = vld [vmem:[%s3826_s30 + $0x8] sm:$0x3]  ;;  %vm892_vm2 = vmand %vm890_vm12, %vm891_vm13  ;;  %p731_p8 = scmp.lt.s32.totalorder %s3289_s26, 1  ;;  %s3834_s23 = sld [smem:[#allocation16_spill]]  ;;  %vm1611_vm12 = vcmask 523264  }
  0x37   : > { %v2660_v22 = vld [vmem:[%s3827_s27] ss:$0 sm:$0xff]  ;;  %v821_v26 = vadd.f32 %v819_v21, %v817_v24  ;;  %vm897_vm6 = vmand %vm895_vm14, %vm896_vm15  ;;  %v3417_v15 = vsel %vm892_vm2, 1.0, %v3148_v47  ;;  %s3835_s22 = sld [smem:[#allocation17_spill]]  ;;  %s3836_s2 = sld [smem:[#allocation18_spill]] }
  0x38   : > { %v779_v27 = vld [vmem:[%s778_s28] sm:$0x1]  ;;  %v3030_v49 = vld [vmem:[%s3829_s1 + $0x8] sm:$0xff]   ;;  %v3420_v16 = vsel %vm897_vm6, 1.0, %v3148_v47  ;;  %s3843_s26 = smov (!%p731_p8, %s3289_s26), 1  ;;  %s3837_s24 = sld [smem:[#allocation19_spill]] }
  0x39   : > { %v802_v28 = vrot.slane %v779_v27, 7  ;;  %v828_v29 = vadd.f32 %v2660_v22, %v821_v26  ;;  %v3028_v46 = vld [vmem:[%s3829_s1] sm:$0xff]   ;;  %s3839_s18 = sld [smem:[#allocation21_spill]]  ;;  %s2786_s27 = sshll.u32 %s3843_s26, 3 }
  0x3a   : > { %2857 = vmatpush3.bf16.msra.mxu1 %v3028_v46  ;;  %v2661_v58 = vld [vmem:[%s3830_s20] ss:$0 sm:$0xff]  ;;  %s3833_s20 = sld [smem:[#allocation7_spill]]  ;;  %s3840_s9 = sld [smem:[#allocation22_spill]] }
  0x3b   : > { %v818_v30 = vsel %vm804_vm0, %v775_v23, %v802_v28  ;;  %v833_v31 = vsel %vm832_vm7, %v828_v29, 0.0  ;;  %v3027_v45 = vld [vmem:[%s3828_s29] sm:$0xff]   ;;  %v3029_v48 = vld [vmem:[%s3828_s29 + $0x8] sm:$0xff]   ;;  %2858 = vmatprep.subr.bf16.mxu1 %v3148_v47  ;;  %vm887_vm0 = vmand %vm885_vm10, %vm886_vm11  ;;  %vm881_vm10 = vcmp.lt.s32.totalorder %v879_v6, 8  ;;  %vm1208_vm11 = vcmask 80896  }
  0x3c   : > { %v822_v32 = vadd.f32 %v820_v25, %v818_v30  ;;  %834 = vadd.xlane.f32.xlu0 %v833_v31  ;;  %2849 = vmatpush3.bf16.msra.mxu0 %v3027_v45  ;;  %v2662_v62 = vld [vmem:[%s3831_s21] ss:$0 sm:$0xff]  ;;  %v3414_v14 = vsel %vm887_vm0, 1.0, %v3148_v47  ;;  %v3426_v28 = vsel %vm881_vm10, 1.0, %v3148_v47 }
  0x3d   : > { %2850 = vmatprep.subr.bf16.mxu0 %v3148_v47  ;;  %v2667_v7 = vld [vmem:[%s3832_s6] ss:$0 sm:$0xff] }
  0x3e   : > { %v829_v33 = vadd.f32 %v2660_v22, %v822_v32  ;;  %2859 = vmatpush3.bf16.msra.mxu1 %v3030_v49 }
  0x3f   : > { %2872 = vmatprep.subr.bf16.mxu1 %v3148_v47 }
  0x40   : > { %v837_v34 = vsel %vm836_vm8, %v829_v33, 0.0  ;;  %2851 = vmatpush3.bf16.msra.mxu0 %v3029_v48  ;;  %s733_s4 = scalar_lea.vmem %s3833_s20, %s3843_s26  ;;  %s3838_s20 = sld [smem:[#allocation20_spill]] }
  0x41   : > { %838 = vadd.xlane.f32.xlu0 %v837_v34  ;;  %2864 = vmatprep.subr.bf16.mxu0 %v3148_v47  ;;  %s738_s21 = scalar_lea.vmem %s3840_s9, %s2786_s27 }
  0xc9   : > { %v835_v35 = vpop.xlane.xlu0 %834 }
  0xca   : > { %v841_v36 = vmul.f32 0.03125, %v835_v35 }
  0xcc   : > { %v843_v37 = vsub.f32 %v828_v29, %v841_v36  ;;  %v2675_v36 = vld [vmem:[%s3781_s12] ss:$0 sm:$0xff] }
  0xce   : > { %v839_v38 = vpop.xlane.xlu0 %838  ;;  %v845_v40 = vmul.f32 %v843_v37, %v843_v37 }
  0xcf   : > { %v842_v39 = vmul.f32 0.03125, %v839_v38 }
  0xd0   : > { %v847_v42 = vsel %vm832_vm7, %v845_v40, 0.0 }
  0xd1   : > { %v844_v41 = vsub.f32 %v829_v33, %v842_v39  ;;  %848 = vadd.xlane.f32.xlu1 %v847_v42 }
  0xd3   : > { %v846_v43 = vmul.f32 %v844_v41, %v844_v41 }
  0xd5   : > { %v850_v44 = vsel %vm836_vm8, %v846_v43, 0.0 }
  0xd6   : > { %851 = vadd.xlane.f32.xlu1 %v850_v44 }
 0x15e   : > { %v849_v50 = vpop.xlane.xlu1 %848 }
 0x15f   : > { %v853_v51 = vmul.f32 0.03125, %v849_v50 }
 0x161   : > { %v855_v52 = vadd.f32 1e-12, %v853_v51 }
 0x163   : > { %v852_v53 = vpop.xlane.xlu1 %851  ;;  %3057 = vrsqrt.f32 %v855_v52 }
 0x164   : > { %v854_v54 = vmul.f32 0.03125, %v852_v53 }
 0x166   : > { %v856_v55 = vadd.f32 1e-12, %v854_v54 }
 0x168   : > { %3059 = vrsqrt.f32 %v856_v55 }
 0x16d   : > { %v3058_v56 = vpop.eup %3057 }
 0x16e   : > { %v859_v57 = vmul.f32 %v3058_v56, %v843_v37 }
 0x170   : > { %v867_v61 = vmul.f32 %v2661_v58, %v859_v57 }
 0x172   : > { %v3060_v59 = vpop.eup %3059  ;;  %v3384_v0 = vadd.f32 %v2662_v62, %v867_v61 }
 0x173   : > { %v860_v60 = vmul.f32 %v3060_v59, %v844_v41 }
 0x175   : > { %v868_v63 = vmul.f32 %v2661_v58, %v860_v60 }
 0x177   : > { %v3386_v1 = vadd.f32 %v2662_v62, %v868_v63  ;;  %v3463_v62 = vld [vmem:[%s733_s4] ss:$0 sm:$0xff] }
 0x179   : > { %v900_v3 = vpack.c.bf16 %v3386_v1, %v3384_v0 }
 0x17b   : > { %2853 = vmatmul.mubr.msk.bf16.vlgmr.msra.gmra.mrb[0].mxu0 %vm832_vm7, %v900_v3  ;;  %2861 = vmatmul.mubr.msk.bf16.vlgmr.msra.gmra.mrb[0].mxu1 %vm832_vm7, %v900_v3 }
 0x17c   : > { %2865 = vmatpush3.bf16.msra.mxu0 %v3031_v2  ;;  %2868 = vmatprep.mubr.msk.bf16.mxu0 %vm3149_vm9, %v3148_v47 }
 0x17d   : > { %2866 = vmatprep.subr.bf16.mxu0 %v3148_v47  ;;  %2874 = vmatprep.mubr.msk.bf16.mxu1 %vm3149_vm9, %v3148_v47 }
 0x180   : > { %2867 = vmatpush3.bf16.msra.mxu0 %v3032_v4 }
 0x181   : > { %2886 = vmatprep.subr.bf16.mxu0 %v3148_v47 }
 0x183   : > { %2869 = vmatmul.mubr.msk.bf16.vlgmr.msra.gmra.mrb[4].mxu0 %vm832_vm7, %v900_v3 }
 0x184   : > { %2888 = vmatprep.mubr.msk.bf16.mxu0 %vm3149_vm9, %v3148_v47 }
 0x24e   : > { %v961_v8 = vpop.f32.mrb[0].mxu0  ;;  %v1027_v9 = vpop.f32.mrb[0].mxu1 }
 0x24f   : > { %v962_v10 = vadd.f32 %v2667_v7, %v961_v8  ;;  %v2854_v12 = vpop.f32.mrb[1].mxu0  ;;  %v2862_v13 = vpop.f32.mrb[1].mxu1  ;;  %v1028_v24 = vadd.f32 %v2671_v11, %v1027_v9 }
 0x250   : > { %v964_v17 = vpop.f32.mrb[2].mxu0  ;;  %v1030_v18 = vpop.f32.mrb[2].mxu1 }
 0x251   : > { %v968_v19 = vmul.f32 0.35355338, %v962_v10  ;;  %v965_v20 = vadd.f32 %v2667_v7, %v964_v17  ;;  %v1031_v21 = vadd.f32 %v2671_v11, %v1030_v18  ;;  %v2855_v22 = vpop.f32.mrb[3].mxu0  ;;  %v2863_v23 = vpop.f32.mrb[3].mxu1 }
 0x253   : > { %v1100_v25 = vmul.f32 %v3414_v14, %v968_v19  ;;  %v1102_v26 = vmul.f32 %v3417_v15, %v968_v19  ;;  %v1104_v27 = vmul.f32 %v3420_v16, %v968_v19  ;;  %v969_v29 = vmul.f32 0.35355338, %v965_v20 }
 0x254   : > { %v1133_v30 = vpack.c.bf16 %v1031_v21, %v1028_v24  ;;  %v1098_v38 = vmul.f32 %v3426_v28, %v968_v19 }
 0x255   : > { %v1108_v31 = vrot.slane %v1100_v25, 6  ;;  %v1099_v32 = vmul.f32 %v3426_v28, %v969_v29  ;;  %v1101_v33 = vmul.f32 %v3414_v14, %v969_v29  ;;  %v1103_v34 = vmul.f32 %v3417_v15, %v969_v29 }
 0x256   : > { %v1105_v35 = vmul.f32 %v3420_v16, %v969_v29  ;;  %v1091_v37 = vpop.f32.mrb[4].mxu0  ;;  %v1115_v39 = vrot.slane %v1102_v26, 4  ;;  %v1122_v40 = vrot.slane %v1104_v27, 2  ;;  %v1150_v41 = vsel %vm832_vm7, %v1133_v30, 0 }
 0x257   : > { %v2870_v42 = vpop.f32.mrb[5].mxu0  ;;  %v1109_v43 = vrot.slane %v1101_v33, 6  ;;  %v1116_v44 = vrot.slane %v1103_v34, 4  ;;  %2873 = vmatpush3.bf16.xpose.msra.mxu1 %v1150_v41  ;;  %v1127_v48 = vsel %vm806_vm1, %v1099_v32, %v1108_v31  ;;  %v1092_v49 = vadd.f32 %v2675_v36, %v1091_v37 }
 0x258   : > { %v1123_v45 = vrot.slane %v1105_v35, 2  ;;  %v1094_v46 = vpop.f32.mrb[6].mxu0  ;;  %v1130_v52 = vpack.c.bf16 %v1127_v48, %v1098_v38  ;;  %2900 = vmatprep.subr.bf16.mxu1 %v3148_v47 }
 0x259   : > { %v1095_v50 = vadd.f32 %v2675_v36, %v1094_v46  ;;  %v2871_v51 = vpop.f32.mrb[7].mxu0  ;;  %v1110_v53 = vsel %vm806_vm1, %v1108_v31, %v1109_v43  ;;  %v1117_v54 = vsel %vm810_vm3, %v1115_v39, %v1116_v44 }
 0x25a   : > { %v1124_v55 = vsel %vm814_vm5, %v1122_v40, %v1123_v45  ;;  %v1128_v57 = vsel %vm810_vm3, %v1110_v53, %v1115_v39  ;;  %v1129_v58 = vsel %vm814_vm5, %v1117_v54, %v1122_v40 }
 0x25b   : > { %v1267_v56 = vpack.c.bf16 %v1095_v50, %v1092_v49  ;;  %v1131_v59 = vpack.c.bf16 %v1129_v58, %v1128_v57  ;;  %v1132_v61 = vpack.c.bf16 %v1124_v55, %v1124_v55 }
 0x25d   : > { %v1278_v60 = vsel %vm812_vm4, %v1267_v56, 0 }
 0x25e   : > { %2887 = vmatpush3.bf16.msra.mxu0 %v1278_v60  ;;  %2875 = vmatmul.mubr.msk.bf16.vlgmr.msra.gmra.mrb[4].mxu1 %vm832_vm7, %v1130_v52 }
 0x25f   : > { %2908 = vmatprep.subr.bf16.mxu0 %v3148_v47  ;;  %2878 = vmatprep.mubr.msk.bf16.mxu1 %vm3149_vm9, %v3148_v47 }
 0x266   : > { %2879 = vmatmul.mubr.msk.bf16.gmra.mrb[8].mxu1 %vm832_vm7, %v1131_v59 }
 0x267   : > { %2882 = vmatprep.mubr.msk.bf16.mxu1 %vm3149_vm9, %v3148_v47 }
 0x26e   : > { %2883 = vmatmul.mubr.msk.bf16.gmra.mrb[12].mxu1 %vm832_vm7, %v1132_v61 }
 0x26f   : > { %2904 = vmatprep.mubr.msk.bf16.mxu1 %vm3149_vm9, %v3148_v47 }
 0x331   : > { %v1186_v63 = vpop.f32.mrb[4].mxu1 }
 0x332   : > { %v1187_v2 = vadd.f32 %v3463_v62, %v1186_v63  ;;  %v2876_v3 = vpop.f32.mrb[5].mxu1 }
 0x333   : > { %v1189_v4 = vpop.f32.mrb[6].mxu1 }
 0x334   : > { %v1190_v5 = vadd.f32 %v3463_v62, %v1189_v4  ;;  %v2877_v6 = vpop.f32.mrb[7].mxu1  ;;  %v1209_v7 = vsel %vm1208_vm11, %v1187_v2, -inf }
 0x335   : > { %1210 = vmax.xlane.f32.xlu0 %v1209_v7 }
 0x336   : > { %v1212_v8 = vsel %vm1208_vm11, %v1190_v5, -inf }
 0x337   : > { %1213 = vmax.xlane.f32.xlu1 %v1212_v8 }
 0x339   : > { %v1194_v9 = vpop.f32.mrb[8].mxu1 }
 0x33a   : > { %v1195_v10 = vadd.f32 %v3463_v62, %v1194_v9  ;;  %v2880_v11 = vpop.f32.mrb[9].mxu1 }
 0x33b   : > { %v1197_v12 = vpop.f32.mrb[10].mxu1  ;;  %v3034_v11 = vld [vmem:[%s3782_s13 + $0x8] sm:$0xff]  }
 0x33c   : > { %v1198_v13 = vadd.f32 %v3463_v62, %v1197_v12  ;;  %v2881_v17 = vpop.f32.mrb[11].mxu1  ;;  %v1215_v18 = vsel %vm1208_vm11, %v1195_v10, -inf }
 0x33d   : > { %1216 = vmax.xlane.f32.xlu0 %v1215_v18 }
 0x33e   : > { %v1218_v19 = vsel %vm1208_vm11, %v1198_v13, -inf }
 0x33f   : > { %1219 = vmax.xlane.f32.xlu1 %v1218_v19 }
 0x341   : > { %v1202_v20 = vpop.f32.mrb[12].mxu1 }
 0x342   : > { %v1203_v21 = vadd.f32 %v3463_v62, %v1202_v20  ;;  %v2884_v22 = vpop.f32.mrb[13].mxu1 }
 0x343   : > { %v1205_v23 = vpop.f32.mrb[14].mxu1 }
 0x344   : > { %v2885_v24 = vpop.f32.mrb[15].mxu1  ;;  %v1221_v25 = vsel %vm1208_vm11, %v1203_v21, -inf }
 0x345   : > { %1222 = vmax.xlane.f32.xlu0 %v1221_v25 }
 0x3c2   : > { %v1211_v26 = vpop.xlane.xlu0 %1210 }
 0x3c3   : > { %v1224_v27 = vsub.f32 %v1187_v2, %v1211_v26 }
 0x3c4   : > { %v1214_v29 = vpop.xlane.xlu1 %1213 }
 0x3c5   : > { %v1229_v30 = vmul.f32 1.442695, %v1224_v27  ;;  %v1225_v31 = vsub.f32 %v1190_v5, %v1214_v29 }
 0x3c7   : > { %3061 = vpow2.f32 %v1229_v30  ;;  %v1231_v32 = vmul.f32 1.442695, %v1225_v31 }
 0x3c9   : > { %3063 = vpow2.f32 %v1231_v32 }
 0x3ca   : > { %v1217_v33 = vpop.xlane.xlu0 %1216 }
 0x3cb   : > { %v1226_v34 = vsub.f32 %v1195_v10, %v1217_v33  ;;  %v3033_v10 = vld [vmem:[%s3782_s13] sm:$0xff]  }
 0x3cc   : > { %v1220_v35 = vpop.xlane.xlu1 %1219  ;;  %2901 = vmatpush3.bf16.msra.mxu1 %v3033_v10 }
 0x3cd   : > { %v1233_v36 = vmul.f32 1.442695, %v1226_v34  ;;  %v1227_v37 = vsub.f32 %v1198_v13, %v1220_v35  ;;  %2902 = vmatprep.subr.bf16.mxu1 %v3148_v47 }
 0x3cf   : > { %3065 = vpow2.f32 %v1233_v36  ;;  %v1235_v38 = vmul.f32 1.442695, %v1227_v37 }
 0x3d0   : > { %2903 = vmatpush3.bf16.msra.mxu1 %v3034_v11 }
 0x3d1   : > { %v3062_v39 = vpop.eup %3061  ;;  %3067 = vpow2.f32 %v1235_v38  ;;  %2916 = vmatprep.subr.bf16.mxu1 %v3148_v47 }
 0x3d2   : > { %v1223_v40 = vpop.xlane.xlu0 %1222  ;;  %v1239_v41 = vsel %vm1208_vm11, %v3062_v39, 0.0 }
 0x3d3   : > { %v3064_v42 = vpop.eup %3063  ;;  %v1228_v43 = vsub.f32 %v1203_v21, %v1223_v40  ;;  %1240 = vadd.xlane.f32.xlu1 %v1239_v41 }
 0x3d4   : > { %v1242_v44 = vsel %vm1208_vm11, %v3064_v42, 0.0 }
 0x3d5   : > { %v1237_v45 = vmul.f32 1.442695, %v1228_v43  ;;  %1243 = vadd.xlane.f32.xlu0 %v1242_v44 }
 0x3d7   : > { %3069 = vpow2.f32 %v1237_v45 }
 0x3d9   : > { %v3066_v46 = vpop.eup %3065 }
 0x3da   : > { %v1245_v48 = vsel %vm1208_vm11, %v3066_v46, 0.0 }
 0x3db   : > { %v3068_v49 = vpop.eup %3067  ;;  %1246 = vadd.xlane.f32.xlu1 %v1245_v48 }
 0x3dc   : > { %v1248_v50 = vsel %vm1208_vm11, %v3068_v49, 0.0 }
 0x3dd   : > { %1249 = vadd.xlane.f32.xlu0 %v1248_v50 }
 0x3e1   : > { %v3070_v51 = vpop.eup %3069 }
 0x3e2   : > { %v1251_v52 = vsel %vm1208_vm11, %v3070_v51, 0.0 }
 0x3e3   : > { %1252 = vadd.xlane.f32.xlu1 %v1251_v52 }
 0x460   : > { %v1241_v53 = vpop.xlane.xlu1 %1240 }
 0x461   : > { %3071 = vrcp.f32 %v1241_v53  ;;  %v2686_v53 = vld [vmem:[%s3783_s14] ss:$0 sm:$0xff] }
 0x462   : > { %v1244_v54 = vpop.xlane.xlu0 %1243 }
 0x463   : > { %3073 = vrcp.f32 %v1244_v54 }
 0x468   : > { %v1247_v55 = vpop.xlane.xlu1 %1246 }
 0x469   : > { %3075 = vrcp.f32 %v1247_v55 }
 0x46a   : > { %v1250_v56 = vpop.xlane.xlu0 %1249 }
 0x46b   : > { %v3072_v57 = vpop.eup %3071  ;;  %3077 = vrcp.f32 %v1250_v56 }
 0x46c   : > { %v1259_v59 = vmul.f32 %v3072_v57, %v3062_v39 }
 0x46d   : > { %v3074_v58 = vpop.eup %3073 }
 0x46e   : > { %v1260_v60 = vmul.f32 %v3074_v58, %v3064_v42 }
 0x470   : > { %v1253_v61 = vpop.xlane.xlu1 %1252  ;;  %v1264_v63 = vpack.c.bf16 %v1260_v60, %v1259_v59 }
 0x471   : > { %3079 = vrcp.f32 %v1253_v61 }
 0x472   : > { %2889 = vmatmul.mubr.msk.bf16.vlgmr.msra.gmra.mrb[8].mxu0 %vm1208_vm11, %v1264_v63 }
 0x473   : > { %v3076_v2 = vpop.eup %3075  ;;  %2892 = vmatprep.mubr.msk.bf16.mxu0 %vm3149_vm9, %v3148_v47 }
 0x474   : > { %v1261_v4 = vmul.f32 %v3076_v2, %v3066_v46 }
 0x475   : > { %v3078_v3 = vpop.eup %3077 }
 0x476   : > { %v1262_v5 = vmul.f32 %v3078_v3, %v3068_v49 }
 0x478   : > { %v1265_v6 = vpack.c.bf16 %v1262_v5, %v1261_v4 }
 0x47a   : > { %2893 = vmatmul.mubr.msk.bf16.gmra.mrb[12].mxu0 %vm1208_vm11, %v1265_v6 }
 0x47b   : > { %v3080_v7 = vpop.eup %3079  ;;  %2896 = vmatprep.mubr.msk.bf16.mxu0 %vm3149_vm9, %v3148_v47 }
 0x47c   : > { %v1263_v8 = vmul.f32 %v3080_v7, %v3070_v51 }
 0x47e   : > { %v1266_v9 = vpack.c.bf16 %v1263_v8, %v1263_v8 }
 0x482   : > { %2897 = vmatmul.mubr.msk.bf16.gmra.mrb[16].mxu0 %vm1208_vm11, %v1266_v9 }
 0x483   : > { %2912 = vmatprep.mubr.msk.bf16.mxu0 %vm3149_vm9, %v3148_v47 }
 0x545   : > { %v1314_v12 = vpop.f32.mrb[8].mxu0 }
 0x546   : > { %v2890_v13 = vpop.f32.mrb[9].mxu0  ;;  %v1336_v31 = vmul.f32 %v3426_v28, %v1314_v12  ;;  %v3036_v12 = vld [vmem:[%s3786_s17 + $0x8] sm:$0xff]  }
 0x547   : > { %v1317_v17 = vpop.f32.mrb[10].mxu0 }
 0x548   : > { %v2891_v18 = vpop.f32.mrb[11].mxu0  ;;  %v1338_v19 = vmul.f32 %v3414_v14, %v1317_v17  ;;  %v1337_v25 = vmul.f32 %v3426_v28, %v1317_v17 }
 0x54a   : > { %v1342_v26 = vrot.slane %v1338_v19, 2 }
 0x54d   : > { %v1322_v20 = vpop.f32.mrb[12].mxu0 }
 0x54e   : > { %v1339_v21 = vmul.f32 %v3414_v14, %v1322_v20  ;;  %v1349_v22 = vmul.f32 %v3417_v15, %v1322_v20  ;;  %v2894_v23 = vpop.f32.mrb[13].mxu0 }
 0x54f   : > { %v1325_v24 = vpop.f32.mrb[14].mxu0  ;;  %v2690_v23 = vld [vmem:[%s3784_s15] ss:$0 sm:$0xff] }
 0x550   : > { %v1343_v27 = vrot.slane %v1339_v21, 2  ;;  %v1350_v29 = vmul.f32 %v3417_v15, %v1325_v24  ;;  %v2895_v30 = vpop.f32.mrb[15].mxu0  ;;  %v1353_v34 = vrot.slane %v1349_v22, 4  ;;  %v1360_v39 = vmul.f32 %v3420_v16, %v1325_v24 }
 0x552   : > { %v1344_v32 = vsel %vm814_vm5, %v1342_v26, %v1343_v27  ;;  %v1348_v33 = vadd.f32 %v1343_v27, %v1337_v25  ;;  %v1354_v35 = vrot.slane %v1350_v29, 4  ;;  %v1364_v45 = vrot.slane %v1360_v39, 6  ;;  %v2691_v29 = vld [vmem:[%s3785_s16] ss:$0 sm:$0xff] }
 0x553   : > { %v1347_v36 = vadd.f32 %v1344_v32, %v1336_v31 }
 0x554   : > { %v1355_v37 = vsel %vm810_vm3, %v1353_v34, %v1354_v35  ;;  %v1359_v38 = vadd.f32 %v1354_v35, %v1348_v33  ;;  %v3037_v34 = vld [vmem:[%s3788_s19] sm:$0xff]   ;;  %v3038_v35 = vld [vmem:[%s3788_s19 + $0x8] sm:$0xff]  }
 0x555   : > { %v1358_v40 = vadd.f32 %v1355_v37, %v1347_v36  ;;  %v1330_v41 = vpop.f32.mrb[16].mxu0  ;;  %v3039_v36 = vld [vmem:[%s3788_s19 + $0x10] sm:$0xff]   ;;  %v3040_v37 = vld [vmem:[%s3788_s19 + $0x18] sm:$0xff]  }
 0x556   : > { %v1361_v42 = vmul.f32 %v3420_v16, %v1330_v41  ;;  %v2898_v43 = vpop.f32.mrb[17].mxu0 }
 0x557   : > { %v1333_v44 = vpop.f32.mrb[18].mxu0 }
 0x558   : > { %v1365_v46 = vrot.slane %v1361_v42, 6  ;;  %v2899_v48 = vpop.f32.mrb[19].mxu0 }
 0x55a   : > { %v1366_v49 = vsel %vm806_vm1, %v1364_v45, %v1365_v46  ;;  %v1370_v50 = vadd.f32 %v1365_v46, %v1359_v38  ;;  %v2692_v38 = vld [vmem:[%s3834_s23] ss:$0 sm:$0xff] }
 0x55b   : > { %v1369_v51 = vadd.f32 %v1366_v49, %v1358_v40 }
 0x55d   : > { %v1371_v52 = vpack.c.bf16 %v1370_v50, %v1369_v51 }
 0x55f   : > { %2905 = vmatmul.mubr.msk.bf16.vlgmr.msra.gmra.mrb[16].mxu1 %vm832_vm7, %v1371_v52 }
 0x560   : > { %2924 = vmatprep.mubr.msk.bf16.mxu1 %vm3149_vm9, %v3148_v47  ;;  %2917 = vmatpush3.bf16.msra.mxu1 %v3037_v34 }
 0x561   : > { %2918 = vmatprep.subr.bf16.mxu1 %v3148_v47 }
 0x564   : > { %2919 = vmatpush3.bf16.msra.mxu1 %v3038_v35 }
 0x565   : > { %2920 = vmatprep.subr.bf16.mxu1 %v3148_v47 }
 0x568   : > { %2921 = vmatpush3.bf16.msra.mxu1 %v3039_v36 }
 0x569   : > { %2922 = vmatprep.subr.bf16.mxu1 %v3148_v47 }
 0x56c   : > { %2923 = vmatpush3.bf16.msra.mxu1 %v3040_v37 }
 0x56d   : > { %2944 = vmatprep.subr.bf16.mxu1 %v3148_v47 }
 0x632   : > { %v1432_v54 = vpop.f32.mrb[16].mxu1 }
 0x633   : > { %v1433_v55 = vadd.f32 %v2686_v53, %v1432_v54  ;;  %v2906_v56 = vpop.f32.mrb[17].mxu1 }
 0x634   : > { %v1435_v57 = vpop.f32.mrb[18].mxu1 }
 0x635   : > { %v1436_v58 = vadd.f32 %v2686_v53, %v1435_v57  ;;  %v2907_v59 = vpop.f32.mrb[19].mxu1  ;;  %v1439_v60 = vadd.f32 %v1433_v55, %v3384_v0 }
 0x637   : > { %v1443_v61 = vsel %vm832_vm7, %v1439_v60, 0.0  ;;  %v1440_v63 = vadd.f32 %v1436_v58, %v3386_v1  ;;  %v3035_v1 = vld [vmem:[%s3786_s17] sm:$0xff]  }
 0x638   : > { %1444 = vadd.xlane.f32.xlu0 %v1443_v61  ;;  %2909 = vmatpush3.bf16.msra.mxu0 %v3035_v1 }
 0x639   : > { %v1446_v2 = vsel %vm836_vm8, %v1440_v63, 0.0  ;;  %2910 = vmatprep.subr.bf16.mxu0 %v3148_v47 }
 0x63a   : > { %1447 = vadd.xlane.f32.xlu1 %v1446_v2 }
 0x63c   : > { %2911 = vmatpush3.bf16.msra.mxu0 %v3036_v12 }
 0x63d   : > { %2928 = vmatprep.subr.bf16.mxu0 %v3148_v47 }
 0x6c5   : > { %v1445_v3 = vpop.xlane.xlu0 %1444 }
 0x6c6   : > { %v1449_v4 = vmul.f32 0.03125, %v1445_v3 }
 0x6c7   : > { %v1448_v5 = vpop.xlane.xlu1 %1447 }
 0x6c8   : > { %v1451_v6 = vsub.f32 %v1439_v60, %v1449_v4  ;;  %v1450_v7 = vmul.f32 0.03125, %v1448_v5  ;;  %v2696_v4 = vld [vmem:[%s3835_s22] ss:$0 sm:$0xff] }
 0x6ca   : > { %v1452_v8 = vsub.f32 %v1440_v63, %v1450_v7  ;;  %v1453_v9 = vmul.f32 %v1451_v6, %v1451_v6 }
 0x6cc   : > { %v1455_v10 = vsel %vm832_vm7, %v1453_v9, 0.0  ;;  %v1454_v11 = vmul.f32 %v1452_v8, %v1452_v8 }
 0x6cd   : > { %1456 = vadd.xlane.f32.xlu0 %v1455_v10 }
 0x6ce   : > { %v1458_v0 = vsel %vm836_vm8, %v1454_v11, 0.0 }
 0x6cf   : > { %1459 = vadd.xlane.f32.xlu1 %v1458_v0 }
 0x75a   : > { %v1457_v13 = vpop.xlane.xlu0 %1456 }
 0x75b   : > { %v1461_v17 = vmul.f32 0.03125, %v1457_v13 }
 0x75c   : > { %v1460_v18 = vpop.xlane.xlu1 %1459 }
 0x75d   : > { %v1463_v19 = vadd.f32 1e-12, %v1461_v17  ;;  %v1462_v20 = vmul.f32 0.03125, %v1460_v18 }
 0x75f   : > { %3081 = vrsqrt.f32 %v1463_v19  ;;  %v1464_v21 = vadd.f32 1e-12, %v1462_v20 }
 0x761   : > { %3083 = vrsqrt.f32 %v1464_v21 }
 0x769   : > { %v3082_v22 = vpop.eup %3081 }
 0x76a   : > { %v1467_v24 = vmul.f32 %v3082_v22, %v1451_v6 }
 0x76b   : > { %v3084_v25 = vpop.eup %3083 }
 0x76c   : > { %v1475_v26 = vmul.f32 %v2690_v23, %v1467_v24  ;;  %v1468_v27 = vmul.f32 %v3084_v25, %v1452_v8 }
 0x76e   : > { %v1476_v30 = vmul.f32 %v2690_v23, %v1468_v27  ;;  %v1483_v31 = vadd.f32 %v2691_v29, %v1475_v26  ;;  %v3041_v26 = vld [vmem:[%s3828_s29 + $0x10] sm:$0xff]  }
 0x76f   : > { %v3042_v27 = vld [vmem:[%s3780_s11 + $0x10] sm:$0xff]  }
 0x770   : > { %v1484_v32 = vadd.f32 %v2691_v29, %v1476_v30  ;;  %v3043_v29 = vld [vmem:[%s3828_s29 + $0x18] sm:$0xff]  }
 0x771   : > { %v3044_v30 = vld [vmem:[%s3780_s11 + $0x18] sm:$0xff]  }
 0x772   : > { %v1485_v33 = vpack.c.bf16 %v1484_v32, %v1483_v31 }
 0x774   : > { %2913 = vmatmul.mubr.msk.bf16.vlgmr.msra.gmra.mrb[20].mxu0 %vm832_vm7, %v1485_v33 }
 0x775   : > { %2932 = vmatprep.mubr.msk.bf16.mxu0 %vm3149_vm9, %v3148_v47  ;;  %2929 = vmatpush3.bf16.msra.mxu0 %v3041_v26 }
 0x776   : > { %2930 = vmatprep.subr.bf16.mxu0 %v3148_v47 }
 0x779   : > { %2931 = vmatpush3.bf16.msra.mxu0 %v3043_v29 }
 0x77a   : > { %2936 = vmatprep.subr.bf16.mxu0 %v3148_v47 }
 0x847   : > { %v1546_v39 = vpop.f32.mrb[20].mxu0 }
 0x848   : > { %v1547_v40 = vadd.f32 %v2692_v38, %v1546_v39  ;;  %v2914_v41 = vpop.f32.mrb[21].mxu0 }
 0x849   : > { %v1549_v42 = vpop.f32.mrb[22].mxu0 }
 0x84a   : > { %v1553_v43 = vmul.f32 %v1547_v40, %v1547_v40  ;;  %v1550_v44 = vadd.f32 %v2692_v38, %v1549_v42  ;;  %v2915_v45 = vpop.f32.mrb[23].mxu0  ;;  %v2702_v38 = vld [vmem:[%s3836_s2] ss:$0 sm:$0xff] }
 0x84c   : > { %v1555_v46 = vmul.f32 %v1553_v43, %v1547_v40  ;;  %v1554_v48 = vmul.f32 %v1550_v44, %v1550_v44  ;;  %v2703_v43 = vld [vmem:[%s3837_s24] ss:$0 sm:$0xff] }
 0x84e   : > { %v1557_v49 = vmul.f32 0.044715, %v1555_v46  ;;  %v1556_v50 = vmul.f32 %v1554_v48, %v1550_v44  ;;  %v3045_v48 = vld [vmem:[%s3829_s1 + $0x10] sm:$0xff]  }
 0x850   : > { %v1559_v51 = vadd.f32 %v1557_v49, %v1547_v40  ;;  %v1558_v52 = vmul.f32 0.044715, %v1556_v50  ;;  %v3046_v50 = vld [vmem:[%s3829_s1 + $0x18] sm:$0xff]  }
 0x852   : > { %v1561_v53 = vmul.f32 0.7978846, %v1559_v51  ;;  %v1560_v54 = vadd.f32 %v1558_v52, %v1550_v44  ;;  %v2709_v51 = vld [vmem:[%s3832_s6 + $0x1] ss:$0 sm:$0xff] }
 0x854   : > { %3085 = vtanh.f32 %v1561_v53  ;;  %v1562_v55 = vmul.f32 0.7978846, %v1560_v54 }
 0x856   : > { %3087 = vtanh.f32 %v1562_v55  ;;  %v2727_v55 = vld [vmem:[%s3781_s12 + $0x1] ss:$0 sm:$0xff] }
 0x85e   : > { %v3086_v56 = vpop.eup %3085 }
 0x85f   : > { %v1565_v57 = vadd.f32 1.0, %v3086_v56 }
 0x860   : > { %v3088_v58 = vpop.eup %3087 }
 0x861   : > { %v1567_v59 = vmul.f32 0.5, %v1565_v57  ;;  %v1566_v60 = vadd.f32 1.0, %v3088_v58 }
 0x863   : > { %v1568_v61 = vmul.f32 0.5, %v1566_v60  ;;  %v1569_v63 = vmul.f32 %v1567_v59, %v1547_v40 }
 0x865   : > { %v1570_v2 = vmul.f32 %v1568_v61, %v1550_v44 }
 0x867   : > { %v1571_v3 = vpack.c.bf16 %v1570_v2, %v1569_v63 }
 0x869   : > { %2925 = vmatmul.mubr.msk.bf16.vlgmr.msra.gmra.mrb[20].mxu1 %vm1611_vm12, %v1571_v3 }
 0x86a   : > { %2948 = vmatprep.mubr.msk.bf16.mxu1 %vm3149_vm9, %v3148_v47  ;;  %2945 = vmatpush3.bf16.msra.mxu1 %v3042_v27 }
 0x86b   : > { %2946 = vmatprep.subr.bf16.mxu1 %v3148_v47 }
 0x86e   : > { %2947 = vmatpush3.bf16.msra.mxu1 %v3044_v30 }
 0x86f   : > { %2966 = vmatprep.subr.bf16.mxu1 %v3148_v47 }
 0x93c   : > { %v1649_v5 = vpop.f32.mrb[20].mxu1 }
 0x93d   : > { %v1650_v6 = vadd.f32 %v2696_v4, %v1649_v5  ;;  %v2926_v7 = vpop.f32.mrb[21].mxu1 }
 0x93e   : > { %v1652_v8 = vpop.f32.mrb[22].mxu1 }
 0x93f   : > { %v1653_v9 = vadd.f32 %v2696_v4, %v1652_v8  ;;  %v2927_v10 = vpop.f32.mrb[23].mxu1  ;;  %v1656_v11 = vadd.f32 %v1650_v6, %v1483_v31 }
 0x941   : > { %v1660_v0 = vsel %vm832_vm7, %v1656_v11, 0.0  ;;  %v1657_v1 = vadd.f32 %v1653_v9, %v1484_v32 }
 0x942   : > { %1661 = vadd.xlane.f32.xlu0 %v1660_v0 }
 0x943   : > { %v1663_v12 = vsel %vm836_vm8, %v1657_v1, 0.0 }
 0x944   : > { %1664 = vadd.xlane.f32.xlu1 %v1663_v12 }
 0x9cf   : > { %v1662_v13 = vpop.xlane.xlu0 %1661 }
 0x9d0   : > { %v1666_v17 = vmul.f32 0.03125, %v1662_v13  ;;  %v2718_v13 = vld [vmem:[%s3779_s10 + $0x1] ss:$0 sm:$0xff] }
 0x9d1   : > { %v1665_v18 = vpop.xlane.xlu1 %1664 }
 0x9d2   : > { %v1668_v19 = vsub.f32 %v1656_v11, %v1666_v17  ;;  %v1667_v20 = vmul.f32 0.03125, %v1665_v18 }
 0x9d4   : > { %v1669_v21 = vsub.f32 %v1657_v1, %v1667_v20  ;;  %v1670_v22 = vmul.f32 %v1668_v19, %v1668_v19 }
 0x9d6   : > { %v1672_v23 = vsel %vm832_vm7, %v1670_v22, 0.0  ;;  %v1671_v24 = vmul.f32 %v1669_v21, %v1669_v21 }
 0x9d7   : > { %1673 = vadd.xlane.f32.xlu0 %v1672_v23 }
 0x9d8   : > { %v1675_v25 = vsel %vm836_vm8, %v1671_v24, 0.0 }
 0x9d9   : > { %1676 = vadd.xlane.f32.xlu1 %v1675_v25 }
 0xa64   : > { %v1674_v31 = vpop.xlane.xlu0 %1673 }
 0xa65   : > { %v1678_v32 = vmul.f32 0.03125, %v1674_v31 }
 0xa66   : > { %v1677_v33 = vpop.xlane.xlu1 %1676 }
 0xa67   : > { %v1680_v34 = vadd.f32 1e-12, %v1678_v32  ;;  %v1679_v35 = vmul.f32 0.03125, %v1677_v33 }
 0xa69   : > { %3089 = vrsqrt.f32 %v1680_v34  ;;  %v1681_v36 = vadd.f32 1e-12, %v1679_v35 }
 0xa6b   : > { %3091 = vrsqrt.f32 %v1681_v36 }
 0xa73   : > { %v3090_v37 = vpop.eup %3089 }
 0xa74   : > { %v1684_v39 = vmul.f32 %v3090_v37, %v1668_v19 }
 0xa75   : > { %v3092_v40 = vpop.eup %3091 }
 0xa76   : > { %v1692_v41 = vmul.f32 %v2702_v38, %v1684_v39  ;;  %v1685_v42 = vmul.f32 %v3092_v40, %v1669_v21 }
 0xa78   : > { %v1693_v44 = vmul.f32 %v2702_v38, %v1685_v42  ;;  %v3588_v45 = vadd.f32 %v2703_v43, %v1692_v41 }
 0xa7a   : > { %v3590_v46 = vadd.f32 %v2703_v43, %v1693_v44 }
 0xa7c   : > { %v1702_v49 = vpack.c.bf16 %v3590_v46, %v3588_v45 }
 0xa7e   : > { %2933 = vmatmul.mubr.msk.bf16.vlgmr.msra.gmra.mrb[24].mxu0 %vm832_vm7, %v1702_v49  ;;  %2949 = vmatmul.mubr.msk.bf16.vlgmr.msra.gmra.mrb[24].mxu1 %vm832_vm7, %v1702_v49 }
 0xa7f   : > { %2937 = vmatpush3.bf16.msra.mxu0 %v3045_v48  ;;  %2940 = vmatprep.mubr.msk.bf16.mxu0 %vm3149_vm9, %v3148_v47 }
 0xa80   : > { %2938 = vmatprep.subr.bf16.mxu0 %v3148_v47  ;;  %2968 = vmatprep.mubr.msk.bf16.mxu1 %vm3149_vm9, %v3148_v47 }
 0xa83   : > { %2939 = vmatpush3.bf16.msra.mxu0 %v3046_v50 }
 0xa84   : > { %2952 = vmatprep.subr.bf16.mxu0 %v3148_v47 }
 0xa86   : > { %2941 = vmatmul.mubr.msk.bf16.vlgmr.msra.gmra.mrb[28].mxu0 %vm832_vm7, %v1702_v49 }
 0xa87   : > { %2954 = vmatprep.mubr.msk.bf16.mxu0 %vm3149_vm9, %v3148_v47 }
 0xb51   : > { %v1765_v52 = vpop.f32.mrb[24].mxu0  ;;  %v1899_v53 = vpop.f32.mrb[24].mxu1 }
 0xb52   : > { %v1766_v54 = vadd.f32 %v2709_v51, %v1765_v52  ;;  %v2934_v56 = vpop.f32.mrb[25].mxu0  ;;  %v2950_v57 = vpop.f32.mrb[25].mxu1  ;;  %v1900_v4 = vadd.f32 %v2727_v55, %v1899_v53 }
 0xb53   : > { %v1768_v58 = vpop.f32.mrb[26].mxu0  ;;  %v1902_v59 = vpop.f32.mrb[26].mxu1 }
 0xb54   : > { %v1772_v60 = vmul.f32 0.35355338, %v1766_v54  ;;  %v1769_v61 = vadd.f32 %v2709_v51, %v1768_v58  ;;  %v1903_v63 = vadd.f32 %v2727_v55, %v1902_v59  ;;  %v2935_v2 = vpop.f32.mrb[27].mxu0  ;;  %v2951_v3 = vpop.f32.mrb[27].mxu1 }
 0xb56   : > { %v1908_v5 = vmul.f32 %v3414_v14, %v1772_v60  ;;  %v1910_v6 = vmul.f32 %v3417_v15, %v1772_v60  ;;  %v1912_v7 = vmul.f32 %v3420_v16, %v1772_v60  ;;  %v1773_v8 = vmul.f32 0.35355338, %v1769_v61 }
 0xb57   : > { %v2068_v9 = vpack.c.bf16 %v1903_v63, %v1900_v4  ;;  %v1906_v18 = vmul.f32 %v3426_v28, %v1772_v60 }
 0xb58   : > { %v1916_v10 = vrot.slane %v1908_v5, 6  ;;  %v1907_v11 = vmul.f32 %v3426_v28, %v1773_v8  ;;  %v1909_v0 = vmul.f32 %v3414_v14, %v1773_v8  ;;  %v1911_v1 = vmul.f32 %v3417_v15, %v1773_v8 }
 0xb59   : > { %v1913_v12 = vmul.f32 %v3420_v16, %v1773_v8  ;;  %v1833_v17 = vpop.f32.mrb[28].mxu0  ;;  %v1923_v19 = vrot.slane %v1910_v6, 4  ;;  %v1930_v20 = vrot.slane %v1912_v7, 2  ;;  %v2079_v21 = vsel %vm812_vm4, %v2068_v9, 0 }
 0xb5a   : > { %v2942_v22 = vpop.f32.mrb[29].mxu0  ;;  %v1917_v23 = vrot.slane %v1909_v0, 6  ;;  %v1924_v24 = vrot.slane %v1911_v1, 4  ;;  %2967 = vmatpush3.bf16.msra.mxu1 %v2079_v21  ;;  %v1935_v27 = vsel %vm806_vm1, %v1907_v11, %v1916_v10  ;;  %v1834_v29 = vadd.f32 %v2718_v13, %v1833_v17 }
 0xb5b   : > { %v1931_v25 = vrot.slane %v1913_v12, 2  ;;  %v1836_v26 = vpop.f32.mrb[30].mxu0  ;;  %v1938_v32 = vpack.c.bf16 %v1935_v27, %v1906_v18  ;;  %2988 = vmatprep.subr.bf16.mxu1 %v3148_v47 }
 0xb5c   : > { %v1837_v30 = vadd.f32 %v2718_v13, %v1836_v26  ;;  %v2943_v31 = vpop.f32.mrb[31].mxu0  ;;  %v1918_v33 = vsel %vm806_vm1, %v1916_v10, %v1917_v23  ;;  %v1925_v34 = vsel %vm810_vm3, %v1923_v19, %v1924_v24 }
 0xb5d   : > { %v1932_v35 = vsel %vm814_vm5, %v1930_v20, %v1931_v25  ;;  %v1936_v37 = vsel %vm810_vm3, %v1918_v33, %v1923_v19  ;;  %v1937_v38 = vsel %vm814_vm5, %v1925_v34, %v1930_v20 }
 0xb5e   : > { %v1941_v36 = vpack.c.bf16 %v1837_v30, %v1834_v29  ;;  %v1939_v39 = vpack.c.bf16 %v1937_v38, %v1936_v37  ;;  %v1940_v41 = vpack.c.bf16 %v1932_v35, %v1932_v35 }
 0xb60   : > { %v1952_v40 = vsel %vm832_vm7, %v1941_v36, 0 }
 0xb61   : > { %2953 = vmatpush3.bf16.xpose.msra.mxu0 %v1952_v40 }
 0xb62   : > { %2980 = vmatprep.subr.bf16.mxu0 %v3148_v47 }
 0xb68   : > { %2955 = vmatmul.mubr.msk.bf16.vlgmr.msra.gmra.mrb[32].mxu0 %vm832_vm7, %v1938_v32 }
 0xb69   : > { %2958 = vmatprep.mubr.msk.bf16.mxu0 %vm3149_vm9, %v3148_v47 }
 0xb70   : > { %2959 = vmatmul.mubr.msk.bf16.gmra.mrb[36].mxu0 %vm832_vm7, %v1939_v39 }
 0xb71   : > { %2962 = vmatprep.mubr.msk.bf16.mxu0 %vm3149_vm9, %v3148_v47 }
 0xb78   : > { %2963 = vmatmul.mubr.msk.bf16.gmra.mrb[40].mxu0 %vm832_vm7, %v1940_v41 }
 0xb79   : > { %2984 = vmatprep.mubr.msk.bf16.mxu0 %vm3149_vm9, %v3148_v47 }
 0xc3b   : > { %v1988_v42 = vpop.f32.mrb[32].mxu0 }
 0xc3c   : > { %v1989_v43 = vadd.f32 %v3463_v62, %v1988_v42  ;;  %v2956_v44 = vpop.f32.mrb[33].mxu0 }
 0xc3d   : > { %v1991_v48 = vpop.f32.mrb[34].mxu0 }
 0xc3e   : > { %v1992_v49 = vadd.f32 %v3463_v62, %v1991_v48  ;;  %v2957_v50 = vpop.f32.mrb[35].mxu0  ;;  %v2010_v51 = vsel %vm1208_vm11, %v1989_v43, -inf }
 0xc3f   : > { %2011 = vmax.xlane.f32.xlu0 %v2010_v51 }
 0xc40   : > { %v2013_v52 = vsel %vm1208_vm11, %v1992_v49, -inf }
 0xc41   : > { %2014 = vmax.xlane.f32.xlu1 %v2013_v52 }
 0xc43   : > { %v1996_v53 = vpop.f32.mrb[36].mxu0 }
 0xc44   : > { %v1997_v54 = vadd.f32 %v3463_v62, %v1996_v53  ;;  %v2960_v55 = vpop.f32.mrb[37].mxu0  ;;  %v3047_v53 = vld [vmem:[%s3782_s13 + $0x10] sm:$0xff]  }
 0xc45   : > { %v1999_v56 = vpop.f32.mrb[38].mxu0  ;;  %2981 = vmatpush3.bf16.msra.mxu0 %v3047_v53 }
 0xc46   : > { %v2000_v57 = vadd.f32 %v3463_v62, %v1999_v56  ;;  %v2961_v58 = vpop.f32.mrb[39].mxu0  ;;  %v2016_v59 = vsel %vm1208_vm11, %v1997_v54, -inf  ;;  %2982 = vmatprep.subr.bf16.mxu0 %v3148_v47 }
 0xc47   : > { %2017 = vmax.xlane.f32.xlu0 %v2016_v59 }
 0xc48   : > { %v2019_v60 = vsel %vm1208_vm11, %v2000_v57, -inf }
 0xc49   : > { %2020 = vmax.xlane.f32.xlu1 %v2019_v60 }
 0xc4b   : > { %v2004_v61 = vpop.f32.mrb[40].mxu0 }
 0xc4c   : > { %v2005_v63 = vadd.f32 %v3463_v62, %v2004_v61  ;;  %v2964_v2 = vpop.f32.mrb[41].mxu0 }
 0xc4d   : > { %v2007_v3 = vpop.f32.mrb[42].mxu0 }
 0xc4e   : > { %v2965_v4 = vpop.f32.mrb[43].mxu0  ;;  %v2022_v5 = vsel %vm1208_vm11, %v2005_v63, -inf }
 0xc4f   : > { %2023 = vmax.xlane.f32.xlu0 %v2022_v5 }
 0xccc   : > { %v2012_v6 = vpop.xlane.xlu0 %2011 }
 0xccd   : > { %v2025_v7 = vsub.f32 %v1989_v43, %v2012_v6 }
 0xcce   : > { %v2015_v8 = vpop.xlane.xlu1 %2014 }
 0xccf   : > { %v2030_v9 = vmul.f32 1.442695, %v2025_v7  ;;  %v2026_v10 = vsub.f32 %v1992_v49, %v2015_v8 }
 0xcd1   : > { %3093 = vpow2.f32 %v2030_v9  ;;  %v2032_v11 = vmul.f32 1.442695, %v2026_v10 }
 0xcd3   : > { %3095 = vpow2.f32 %v2032_v11 }
 0xcd4   : > { %v2018_v0 = vpop.xlane.xlu0 %2017 }
 0xcd5   : > { %v2027_v1 = vsub.f32 %v1997_v54, %v2018_v0  ;;  %v3048_v54 = vld [vmem:[%s3782_s13 + $0x18] sm:$0xff]  }
 0xcd6   : > { %v2021_v12 = vpop.xlane.xlu1 %2020  ;;  %2983 = vmatpush3.bf16.msra.mxu0 %v3048_v54 }
 0xcd7   : > { %v2034_v13 = vmul.f32 1.442695, %v2027_v1  ;;  %v2028_v17 = vsub.f32 %v2000_v57, %v2021_v12  ;;  %2996 = vmatprep.subr.bf16.mxu0 %v3148_v47 }
 0xcd9   : > { %3097 = vpow2.f32 %v2034_v13  ;;  %v2036_v62 = vmul.f32 1.442695, %v2028_v17 }
 0xcdb   : > { %v3094_v18 = vpop.eup %3093  ;;  %3099 = vpow2.f32 %v2036_v62 }
 0xcdc   : > { %v2024_v19 = vpop.xlane.xlu0 %2023  ;;  %v2040_v20 = vsel %vm1208_vm11, %v3094_v18, 0.0 }
 0xcdd   : > { %v3096_v21 = vpop.eup %3095  ;;  %v2029_v22 = vsub.f32 %v2005_v63, %v2024_v19  ;;  %2041 = vadd.xlane.f32.xlu1 %v2040_v20 }
 0xcde   : > { %v2043_v23 = vsel %vm1208_vm11, %v3096_v21, 0.0 }
 0xcdf   : > { %v2038_v24 = vmul.f32 1.442695, %v2029_v22  ;;  %2044 = vadd.xlane.f32.xlu0 %v2043_v23 }
 0xce1   : > { %3101 = vpow2.f32 %v2038_v24 }
 0xce3   : > { %v3098_v25 = vpop.eup %3097 }
 0xce4   : > { %v2046_v26 = vsel %vm1208_vm11, %v3098_v25, 0.0 }
 0xce5   : > { %v3100_v27 = vpop.eup %3099  ;;  %2047 = vadd.xlane.f32.xlu1 %v2046_v26 }
 0xce6   : > { %v2049_v29 = vsel %vm1208_vm11, %v3100_v27, 0.0 }
 0xce7   : > { %2050 = vadd.xlane.f32.xlu0 %v2049_v29 }
 0xceb   : > { %v3102_v30 = vpop.eup %3101 }
 0xcec   : > { %v2052_v31 = vsel %vm1208_vm11, %v3102_v30, 0.0 }
 0xced   : > { %2053 = vadd.xlane.f32.xlu1 %v2052_v31 }
 0xd6a   : > { %v2042_v32 = vpop.xlane.xlu1 %2041 }
 0xd6b   : > { %3103 = vrcp.f32 %v2042_v32 }
 0xd6c   : > { %v2045_v33 = vpop.xlane.xlu0 %2044 }
 0xd6d   : > { %3105 = vrcp.f32 %v2045_v33 }
 0xd72   : > { %v2048_v34 = vpop.xlane.xlu1 %2047 }
 0xd73   : > { %3107 = vrcp.f32 %v2048_v34 }
 0xd74   : > { %v2051_v35 = vpop.xlane.xlu0 %2050 }
 0xd75   : > { %v3104_v36 = vpop.eup %3103  ;;  %3109 = vrcp.f32 %v2051_v35 }
 0xd76   : > { %v2060_v38 = vmul.f32 %v3104_v36, %v3094_v18 }
 0xd77   : > { %v3106_v37 = vpop.eup %3105 }
 0xd78   : > { %v2061_v39 = vmul.f32 %v3106_v37, %v3096_v21 }
 0xd7a   : > { %v2054_v40 = vpop.xlane.xlu1 %2053  ;;  %v2065_v41 = vpack.c.bf16 %v2061_v39, %v2060_v38 }
 0xd7b   : > { %3111 = vrcp.f32 %v2054_v40 }
 0xd7c   : > { %2969 = vmatmul.mubr.msk.bf16.vlgmr.msra.gmra.mrb[28].mxu1 %vm1208_vm11, %v2065_v41 }
 0xd7d   : > { %v3108_v42 = vpop.eup %3107  ;;  %2972 = vmatprep.mubr.msk.bf16.mxu1 %vm3149_vm9, %v3148_v47 }
 0xd7e   : > { %v2062_v44 = vmul.f32 %v3108_v42, %v3098_v25 }
 0xd7f   : > { %v3110_v43 = vpop.eup %3109 }
 0xd80   : > { %v2063_v48 = vmul.f32 %v3110_v43, %v3100_v27  ;;  %v2742_v27 = vld [vmem:[%s3783_s14 + $0x1] ss:$0 sm:$0xff] }
 0xd82   : > { %v2066_v49 = vpack.c.bf16 %v2063_v48, %v2062_v44 }
 0xd84   : > { %2973 = vmatmul.mubr.msk.bf16.gmra.mrb[32].mxu1 %vm1208_vm11, %v2066_v49 }
 0xd85   : > { %v3112_v50 = vpop.eup %3111  ;;  %2976 = vmatprep.mubr.msk.bf16.mxu1 %vm3149_vm9, %v3148_v47 }
 0xd86   : > { %v2064_v51 = vmul.f32 %v3112_v50, %v3102_v30  ;;  %v3050_v50 = vld [vmem:[%s3786_s17 + $0x18] sm:$0xff]  }
 0xd88   : > { %v2067_v52 = vpack.c.bf16 %v2064_v51, %v2064_v51 }
 0xd8c   : > { %2977 = vmatmul.mubr.msk.bf16.gmra.mrb[36].mxu1 %vm1208_vm11, %v2067_v52 }
 0xd8d   : > { %2992 = vmatprep.mubr.msk.bf16.mxu1 %vm3149_vm9, %v3148_v47 }
 0xe4f   : > { %v2115_v55 = vpop.f32.mrb[28].mxu1 }
 0xe50   : > { %v2970_v56 = vpop.f32.mrb[29].mxu1  ;;  %v2137_v9 = vmul.f32 %v3426_v28, %v2115_v55 }
 0xe51   : > { %v2118_v57 = vpop.f32.mrb[30].mxu1 }
 0xe52   : > { %v2971_v58 = vpop.f32.mrb[31].mxu1  ;;  %v2139_v59 = vmul.f32 %v3414_v14, %v2118_v57  ;;  %v2138_v4 = vmul.f32 %v3426_v28, %v2118_v57 }
 0xe53   : > { %v2748_v58 = vld [vmem:[%s3784_s15 + $0x1] ss:$0 sm:$0xff] }
 0xe54   : > { %v2143_v5 = vrot.slane %v2139_v59, 2 }
 0xe57   : > { %v2123_v60 = vpop.f32.mrb[32].mxu1 }
 0xe58   : > { %v2140_v61 = vmul.f32 %v3414_v14, %v2123_v60  ;;  %v2150_v63 = vmul.f32 %v3417_v15, %v2123_v60  ;;  %v2974_v2 = vpop.f32.mrb[33].mxu1 }
 0xe59   : > { %v2126_v3 = vpop.f32.mrb[34].mxu1  ;;  %v2749_v2 = vld [vmem:[%s3785_s16 + $0x1] ss:$0 sm:$0xff] }
 0xe5a   : > { %v2144_v6 = vrot.slane %v2140_v61, 2  ;;  %v2151_v7 = vmul.f32 %v3417_v15, %v2126_v3  ;;  %v2975_v8 = vpop.f32.mrb[35].mxu1  ;;  %v2154_v0 = vrot.slane %v2150_v63, 4  ;;  %v2161_v17 = vmul.f32 %v3420_v16, %v2126_v3 }
 0xe5b   : > { %v3052_v8 = vld [vmem:[%s3788_s19 + $0x28] sm:$0xff]  }
 0xe5c   : > { %v2145_v10 = vsel %vm814_vm5, %v2143_v5, %v2144_v6  ;;  %v2149_v11 = vadd.f32 %v2144_v6, %v2138_v4  ;;  %v2155_v1 = vrot.slane %v2151_v7, 4  ;;  %v2165_v21 = vrot.slane %v2161_v17, 6  ;;  %v3051_v7 = vld [vmem:[%s3788_s19 + $0x20] sm:$0xff]  }
 0xe5d   : > { %v2148_v12 = vadd.f32 %v2145_v10, %v2137_v9  ;;  %v3053_v9 = vld [vmem:[%s3788_s19 + $0x30] sm:$0xff]   ;;  %v3054_v10 = vld [vmem:[%s3788_s19 + $0x38] sm:$0xff]  }
 0xe5e   : > { %v2156_v14 = vsel %vm810_vm3, %v2154_v0, %v2155_v1  ;;  %v2160_v13 = vadd.f32 %v2155_v1, %v2149_v11  ;;  %v2755_v11 = vld [vmem:[%s3834_s23 + $0x1] ss:$0 sm:$0xff] }
 0xe5f   : > { %v2159_v62 = vadd.f32 %v2156_v14, %v2148_v12  ;;  %v2131_v18 = vpop.f32.mrb[36].mxu1 }
 0xe60   : > { %v2162_v19 = vmul.f32 %v3420_v16, %v2131_v18  ;;  %v2978_v20 = vpop.f32.mrb[37].mxu1 }
 0xe61   : > { %v2134_v15 = vpop.f32.mrb[38].mxu1 }
 0xe62   : > { %v2166_v22 = vrot.slane %v2162_v19, 6  ;;  %v2979_v28 = vpop.f32.mrb[39].mxu1 }
 0xe64   : > { %v2167_v23 = vsel %vm806_vm1, %v2165_v21, %v2166_v22  ;;  %v2171_v24 = vadd.f32 %v2166_v22, %v2160_v13 }
 0xe65   : > { %v2170_v25 = vadd.f32 %v2167_v23, %v2159_v62 }
 0xe67   : > { %v2172_v26 = vpack.c.bf16 %v2171_v24, %v2170_v25 }
 0xe69   : > { %2985 = vmatmul.mubr.msk.bf16.vlgmr.msra.gmra.mrb[44].mxu0 %vm832_vm7, %v2172_v26 }
 0xe6a   : > { %3004 = vmatprep.mubr.msk.bf16.mxu0 %vm3149_vm9, %v3148_v47  ;;  %2997 = vmatpush3.bf16.msra.mxu0 %v3051_v7 }
 0xe6b   : > { %2998 = vmatprep.subr.bf16.mxu0 %v3148_v47 }
 0xe6e   : > { %2999 = vmatpush3.bf16.msra.mxu0 %v3052_v8 }
 0xe6f   : > { %3000 = vmatprep.subr.bf16.mxu0 %v3148_v47 }
 0xe72   : > { %3001 = vmatpush3.bf16.msra.mxu0 %v3053_v9 }
 0xe73   : > { %3002 = vmatprep.subr.bf16.mxu0 %v3148_v47 }
 0xe76   : > { %3003 = vmatpush3.bf16.msra.mxu0 %v3054_v10 }
 0xf3c   : > { %v2235_v16 = vpop.f32.mrb[44].mxu0 }
 0xf3d   : > { %v2236_v29 = vadd.f32 %v2742_v27, %v2235_v16  ;;  %v2986_v30 = vpop.f32.mrb[45].mxu0 }
 0xf3e   : > { %v2238_v31 = vpop.f32.mrb[46].mxu0 }
 0xf3f   : > { %v2239_v32 = vadd.f32 %v2742_v27, %v2238_v31  ;;  %v2987_v33 = vpop.f32.mrb[47].mxu0  ;;  %v2242_v34 = vadd.f32 %v2236_v29, %v3588_v45 }
 0xf41   : > { %v2248_v35 = vsel %vm832_vm7, %v2242_v34, 0.0  ;;  %v2243_v36 = vadd.f32 %v2239_v32, %v3590_v46  ;;  %v3049_v46 = vld [vmem:[%s3786_s17 + $0x10] sm:$0xff]  }
 0xf42   : > { %2249 = vadd.xlane.f32.xlu0 %v2248_v35  ;;  %2989 = vmatpush3.bf16.msra.mxu1 %v3049_v46 }
 0xf43   : > { %v2251_v37 = vsel %vm836_vm8, %v2243_v36, 0.0  ;;  %2990 = vmatprep.subr.bf16.mxu1 %v3148_v47 }
 0xf44   : > { %2252 = vadd.xlane.f32.xlu1 %v2251_v37 }
 0xf46   : > { %2991 = vmatpush3.bf16.msra.mxu1 %v3050_v50 }
 0xf47   : > { %3008 = vmatprep.subr.bf16.mxu1 %v3148_v47 }
 0xfcf   : > { %v2250_v38 = vpop.xlane.xlu0 %2249 }
 0xfd0   : > { %v2254_v39 = vmul.f32 0.03125, %v2250_v38 }
 0xfd1   : > { %v2253_v40 = vpop.xlane.xlu1 %2252 }
 0xfd2   : > { %v2256_v41 = vsub.f32 %v2242_v34, %v2254_v39  ;;  %v2255_v42 = vmul.f32 0.03125, %v2253_v40  ;;  %v2768_v34 = vld [vmem:[%s3835_s22 + $0x1] ss:$0 sm:$0xff] }
 0xfd4   : > { %v2257_v43 = vsub.f32 %v2243_v36, %v2255_v42  ;;  %v2258_v44 = vmul.f32 %v2256_v41, %v2256_v41 }
 0xfd6   : > { %v2260_v48 = vsel %vm832_vm7, %v2258_v44, 0.0  ;;  %v2259_v49 = vmul.f32 %v2257_v43, %v2257_v43 }
 0xfd7   : > { %2261 = vadd.xlane.f32.xlu0 %v2260_v48 }
 0xfd8   : > { %v2263_v45 = vsel %vm836_vm8, %v2259_v49, 0.0 }
 0xfd9   : > { %2264 = vadd.xlane.f32.xlu1 %v2263_v45 }
0x1064   : > { %v2262_v51 = vpop.xlane.xlu0 %2261 }
0x1065   : > { %v2266_v52 = vmul.f32 0.03125, %v2262_v51 }
0x1066   : > { %v2265_v53 = vpop.xlane.xlu1 %2264 }
0x1067   : > { %v2268_v54 = vadd.f32 1e-12, %v2266_v52  ;;  %v2267_v55 = vmul.f32 0.03125, %v2265_v53 }
0x1069   : > { %3113 = vrsqrt.f32 %v2268_v54  ;;  %v2269_v56 = vadd.f32 1e-12, %v2267_v55 }
0x106b   : > { %3115 = vrsqrt.f32 %v2269_v56  ;;  %v3055_v56 = vld [vmem:[%s3838_s20] sm:$0xff]  }
0x1073   : > { %v3114_v57 = vpop.eup %3113 }
0x1074   : > { %v2272_v59 = vmul.f32 %v3114_v57, %v2256_v41  ;;  %v3056_v57 = vld [vmem:[%s3838_s20 + $0x8] sm:$0xff]  }
0x1075   : > { %v3116_v60 = vpop.eup %3115 }
0x1076   : > { %v2280_v61 = vmul.f32 %v2748_v58, %v2272_v59  ;;  %v2273_v63 = vmul.f32 %v3116_v60, %v2257_v43 }
0x1078   : > { %v2281_v3 = vmul.f32 %v2748_v58, %v2273_v63  ;;  %v2288_v4 = vadd.f32 %v2749_v2, %v2280_v61 }
0x107a   : > { %v2289_v5 = vadd.f32 %v2749_v2, %v2281_v3 }
0x107c   : > { %v2290_v6 = vpack.c.bf16 %v2289_v5, %v2288_v4 }
0x107e   : > { %2993 = vmatmul.mubr.msk.bf16.vlgmr.msra.gmra.mrb[40].mxu1 %vm832_vm7, %v2290_v6 }
0x107f   : > { %3012 = vmatprep.mubr.msk.bf16.mxu1 %vm3149_vm9, %v3148_v47  ;;  %3009 = vmatpush3.bf16.msra.mxu1 %v3055_v56 }
0x1080   : > { %3010 = vmatprep.subr.bf16.mxu1 %v3148_v47  ;;  %v2777_v47 = vld [vmem:[%s3837_s24 + $0x1] ss:$0 sm:$0xff] }
0x1083   : > { %3011 = vmatpush3.bf16.msra.mxu1 %v3056_v57 }
0x1151   : > { %v2353_v0 = vpop.f32.mrb[40].mxu1 }
0x1152   : > { %v2354_v1 = vadd.f32 %v2755_v11, %v2353_v0  ;;  %v2994_v12 = vpop.f32.mrb[41].mxu1 }
0x1153   : > { %v2356_v14 = vpop.f32.mrb[42].mxu1 }
0x1154   : > { %v2360_v13 = vmul.f32 %v2354_v1, %v2354_v1  ;;  %v2357_v17 = vadd.f32 %v2755_v11, %v2356_v14  ;;  %v2995_v62 = vpop.f32.mrb[43].mxu1 }
0x1156   : > { %v2362_v18 = vmul.f32 %v2360_v13, %v2354_v1  ;;  %v2361_v19 = vmul.f32 %v2357_v17, %v2357_v17 }
0x1158   : > { %v2364_v20 = vmul.f32 0.044715, %v2362_v18  ;;  %v2363_v15 = vmul.f32 %v2361_v19, %v2357_v17 }
0x115a   : > { %v2366_v21 = vadd.f32 %v2364_v20, %v2354_v1  ;;  %v2365_v22 = vmul.f32 0.044715, %v2363_v15 }
0x115c   : > { %v2368_v28 = vmul.f32 0.7978846, %v2366_v21  ;;  %v2367_v23 = vadd.f32 %v2365_v22, %v2357_v17 }
0x115e   : > { %3117 = vtanh.f32 %v2368_v28  ;;  %v2369_v24 = vmul.f32 0.7978846, %v2367_v23 }
0x1160   : > { %3119 = vtanh.f32 %v2369_v24 }
0x1168   : > { %v3118_v25 = vpop.eup %3117 }
0x1169   : > { %v2372_v26 = vadd.f32 1.0, %v3118_v25 }
0x116a   : > { %v3120_v27 = vpop.eup %3119 }
0x116b   : > { %v2374_v16 = vmul.f32 0.5, %v2372_v26  ;;  %v2373_v29 = vadd.f32 1.0, %v3120_v27 }
0x116d   : > { %v2375_v30 = vmul.f32 0.5, %v2373_v29  ;;  %v2376_v31 = vmul.f32 %v2374_v16, %v2354_v1  ;;  %v2778_v1 = vld [vmem:[%s3839_s18] ss:$0 sm:$0xff] }
0x116f   : > { %v2377_v32 = vmul.f32 %v2375_v30, %v2357_v17 }
0x1171   : > { %v2378_v33 = vpack.c.bf16 %v2377_v32, %v2376_v31 }
0x1173   : > { %3005 = vmatmul.mubr.msk.bf16.vlgmr.msra.gmra.mrb[48].mxu0 %vm1611_vm12, %v2378_v33 }
0x1246   : > { %v2457_v35 = vpop.f32.mrb[48].mxu0 }
0x1247   : > { %v2458_v36 = vadd.f32 %v2768_v34, %v2457_v35  ;;  %v3006_v37 = vpop.f32.mrb[49].mxu0 }
0x1248   : > { %v2460_v38 = vpop.f32.mrb[50].mxu0 }
0x1249   : > { %v2461_v39 = vadd.f32 %v2768_v34, %v2460_v38  ;;  %v3007_v40 = vpop.f32.mrb[51].mxu0  ;;  %v2464_v41 = vadd.f32 %v2458_v36, %v2288_v4  ;;  %v2776_v4 = vld [vmem:[%s3836_s2 + $0x1] ss:$0 sm:$0xff] }
0x124b   : > { %v2470_v42 = vsel %vm832_vm7, %v2464_v41, 0.0  ;;  %v2465_v43 = vadd.f32 %v2461_v39, %v2289_v5 }
0x124c   : > { %2471 = vadd.xlane.f32.xlu0 %v2470_v42 }
0x124d   : > { %v2473_v44 = vsel %vm836_vm8, %v2465_v43, 0.0 }
0x124e   : > { %2474 = vadd.xlane.f32.xlu1 %v2473_v44 }
0x12d9   : > { %v2472_v48 = vpop.xlane.xlu0 %2471 }
0x12da   : > { %v2476_v49 = vmul.f32 0.03125, %v2472_v48 }
0x12db   : > { %v2475_v45 = vpop.xlane.xlu1 %2474 }
0x12dc   : > { %v2478_v46 = vsub.f32 %v2464_v41, %v2476_v49  ;;  %v2477_v50 = vmul.f32 0.03125, %v2475_v45 }
0x12de   : > { %v2479_v51 = vsub.f32 %v2465_v43, %v2477_v50  ;;  %v2480_v52 = vmul.f32 %v2478_v46, %v2478_v46 }
0x12e0   : > { %v2482_v53 = vsel %vm832_vm7, %v2480_v52, 0.0  ;;  %v2481_v54 = vmul.f32 %v2479_v51, %v2479_v51 }
0x12e1   : > { %2483 = vadd.xlane.f32.xlu0 %v2482_v53 }
0x12e2   : > { %v2485_v55 = vsel %vm836_vm8, %v2481_v54, 0.0 }
0x12e3   : > { %2486 = vadd.xlane.f32.xlu1 %v2485_v55 }
0x136e   : > { %v2484_v58 = vpop.xlane.xlu0 %2483 }
0x136f   : > { %v2488_v59 = vmul.f32 0.03125, %v2484_v58 }
0x1370   : > { %v2487_v60 = vpop.xlane.xlu1 %2486 }
0x1371   : > { %v2490_v61 = vadd.f32 1e-12, %v2488_v59  ;;  %v2489_v63 = vmul.f32 0.03125, %v2487_v60 }
0x1373   : > { %3121 = vrsqrt.f32 %v2490_v61  ;;  %v2491_v2 = vadd.f32 1e-12, %v2489_v63 }
0x1375   : > { %3123 = vrsqrt.f32 %v2491_v2 }
0x137d   : > { %v3122_v3 = vpop.eup %3121 }
0x137e   : > { %v2494_v5 = vmul.f32 %v3122_v3, %v2478_v46 }
0x137f   : > { %v3124_v6 = vpop.eup %3123 }
0x1380   : > { %v2502_v7 = vmul.f32 %v2776_v4, %v2494_v5  ;;  %v2495_v8 = vmul.f32 %v3124_v6, %v2479_v51 }
0x1382   : > { %v2503_v9 = vmul.f32 %v2776_v4, %v2495_v8  ;;  %v2510_v10 = vadd.f32 %v2777_v47, %v2502_v7 }
0x1384   : > { %v2511_v11 = vadd.f32 %v2777_v47, %v2503_v9 }
0x1386   : > { %v2512_v0 = vpack.c.bf16 %v2511_v11, %v2510_v10 }
0x1388   : > { %3013 = vmatmul.mubr.msk.bf16.vlgmr.msra.gmra.mrb[44].mxu1 %vm832_vm7, %v2512_v0 }
0x145b   : > { %v2573_v12 = vpop.f32.mrb[44].mxu1 }
0x145c   : > { %v2574_v14 = vadd.f32 %v2778_v1, %v2573_v12  ;;  %v3014_v13 = vpop.f32.mrb[45].mxu1 }
0x145d   : > { %v2576_v17 = vpop.f32.mrb[46].mxu1 }
0x145e   : > { %v2787_v62 = vpack.c.bf16 %v2574_v14, %v2574_v14  ;;  %v2577_v18 = vadd.f32 %v2778_v1, %v2576_v17  ;;  %v3015_v19 = vpop.f32.mrb[47].mxu1 }
0x1460   : > { %2588 = vst [vmem:[%s738_s21] sm:$0xf] %v2787_v62  ;;  %v2788_v20 = vpack.c.bf16 %v2577_v18, %v2577_v18 }
0x1462   : > { %2589 = vst [vmem:[%s738_s21 + $0x4] sm:$0x1] %v2788_v20 }
0x1463 PF: > { %s3841_s28 = sld [smem:[#allocation5_spill]] }
0x1469   : > { %s41_s3 = sadd.s32 1, %s3841_s28  }
0x146a   : > { %p38_p9 = scmp.ge.s32.totalorder %s41_s3, 4  }
0x146c   :  { %40 = sbr.rel (!%p38_p9) target bundleno = 30 (0x1e), region = 172 }

</bundles_post_ra>
